<compile_context>
chip_gen: v7x
topology: tpu7x:2x2x1
jax: 0.10.0
libtpu: 0.0.40
codegen_flags: <defaults>
</compile_context>

<pallas_src>
import functools
import math

import jax
import jax.numpy as jnp
from jax.experimental import pallas as pl
from jax.experimental.pallas import tpu as pltpu

# ---------------- module hyper-parameters (AttentionAVGPool defaults) --------
D_MODEL = 128
NHEAD = 4
HEAD_DIM = D_MODEL // NHEAD
NQ = 3                               # nn.Embedding(3, d_model) query slots
QROWS = 16                           # NHEAD*NQ = 12 query rows padded to 16
LN_EPS = 1e-5
_ATTN_SCALE = 1.0 / math.sqrt(HEAD_DIM)

assert D_MODEL % NHEAD == 0, "heads must tile the lane dimension evenly"


# ---------------- in-kernel building blocks ----------------------------------
def _layer_norm(x, gamma, beta):
    mu = jnp.mean(x, axis=-1, keepdims=True)
    var = jnp.mean((x - mu) ** 2, axis=-1, keepdims=True)
    return (x - mu) * jax.lax.rsqrt(var + LN_EPS) * gamma + beta


def _gelu(x):
    # tanh approximation of GELU (EUP tanh; see TODO above).
    c = math.sqrt(2.0 / math.pi)
    return 0.5 * x * (1.0 + jnp.tanh(c * (x + 0.044715 * x * x * x)))


# ---------------- fused, gridded Pallas kernel --------------------------------
def attention_avg_pool_kernel(x_ref,
                              w_emb_ref, b_emb_ref, ln_emb_ref,
                              w_kv_ref, b_kv_ref,
                              q_stack_ref, head_mask_ref,
                              w_o_ref, b_o_ref,
                              w_out_ref, b_out_ref, ln_out_ref,
                              o_ref, *, tb, seq):
    D = D_MODEL
    f32 = jnp.float32
    bf16 = jnp.bfloat16

    x = x_ref[...]                                           # (tb*seq, D) bf16

    # ---- embedding_layer: Linear -> LayerNorm -> GELU (LN/GELU in f32)
    h = jnp.dot(x, w_emb_ref[...], preferred_element_type=f32) + b_emb_ref[...]
    h = _gelu(_layer_norm(h, ln_emb_ref[0:1, :], ln_emb_ref[1:2, :]))

    # ---- fused K/V projection (one bf16 matmul), lane-aligned split
    kv = jnp.dot(h.astype(bf16), w_kv_ref[...],
                 preferred_element_type=f32) + b_kv_ref[...]
    k3 = kv[:, :D].astype(bf16).reshape(tb, seq, D)          # (tb, seq, D)
    v3 = kv[:, D:].astype(bf16).reshape(tb, seq, D)

    # ---- batched attention over the whole tile (no per-batch Python loop)
    # q_stack rows are (head-major, query), head-masked and pre-scaled.
    qb = jnp.broadcast_to(q_stack_ref[...][None, :, :], (tb, QROWS, D))
    s = jnp.einsum('bqd,bkd->bqk', qb, k3,
                   preferred_element_type=f32)               # (tb, QROWS, seq)
    s = s - jnp.max(s, axis=-1, keepdims=True)
    p = jnp.exp(s)
    p = p * pl.reciprocal(jnp.sum(p, axis=-1, keepdims=True), approx=True)
    o = jnp.einsum('bqk,bkd->bqd', p.astype(bf16), v3,
                   preferred_element_type=f32)               # (tb, QROWS, D)

    # keep only each head's own lanes, then sum the disjoint-lane head blocks
    o = o * head_mask_ref[...][None, :, :]
    o3 = (o[:, 0 * NQ:1 * NQ] + o[:, 1 * NQ:2 * NQ]
          + o[:, 2 * NQ:3 * NQ] + o[:, 3 * NQ:4 * NQ])       # (tb, NQ, D)

    # ---- attention out_proj (one bf16 matmul over all tb*NQ rows)
    r = jnp.dot(o3.reshape(tb * NQ, D).astype(bf16), w_o_ref[...],
                preferred_element_type=f32) + b_o_ref[...]   # (tb*NQ, D)
    r3 = r.reshape(tb, NQ, D)

    # ---- output head: lane-dense (tb, 3*D) layout -> single K=384 matmul
    cat = jnp.concatenate([r3[:, i, :] for i in range(NQ)], axis=-1)  # (tb, 3D)
    y = jnp.dot(cat.astype(bf16), w_out_ref[...],
                preferred_element_type=f32) + b_out_ref[...]          # (tb, D)
    y = _gelu(_layer_norm(y, ln_out_ref[0:1, :], ln_out_ref[1:2, :]))

    o_ref[...] = y


# ---------------- wrapper ------------------------------------------------------
def _pick_batch_tile(bg, target):
    """Largest tile <= target that divides bg and keeps blocks (8,128)-legal."""
    if bg <= target:
        return bg                       # single grid step; block == full array
    for tbc in range(target, 0, -1):
        if bg % tbc == 0 and tbc % 8 == 0:
            return tbc
    return bg                           # fall back: single grid step


def _precompute_query_constants(params):
    """Input-independent attention constants, computed once in XLA."""
    d = D_MODEL
    q = jnp.dot(params["query"], params["w_q"]) + params["b_q"]      # (NQ, d)
    q = q * _ATTN_SCALE
    lane = jnp.arange(d)[None, :]
    masks = [((lane // HEAD_DIM) == h).astype(jnp.float32) for h in range(NHEAD)]
    q_rows = jnp.concatenate([q * m for m in masks], axis=0)          # (12, d)
    hm_rows = jnp.concatenate([jnp.broadcast_to(m, (NQ, d)) for m in masks],
                              axis=0)                                 # (12, d)
    pad = QROWS - NHEAD * NQ
    q_stack = jnp.pad(q_rows, ((0, pad), (0, 0))).astype(jnp.bfloat16)
    head_mask = jnp.pad(hm_rows, ((0, pad), (0, 0)))                  # f32
    return q_stack, head_mask


def attention_avg_pool_forward(params, x, *, block_bg=8):
    bs = x.shape[0]
    xr = x.reshape(-1, x.shape[-2], x.shape[-1]) if x.ndim == 4 else x
    BG, S, D = xr.shape
    assert D == D_MODEL, (D, D_MODEL)

    tb = _pick_batch_tile(BG, block_bg)
    grid = (BG // tb,)
    assert (tb * S) % 8 == 0 or tb == BG, (
        "per-tile row count must be sublane-aligned (pad S to a multiple of 8)")

    # lane-dense bf16 input slab (halves HBM bytes; matmuls are bf16 anyway)
    x2d = xr.reshape(BG * S, D).astype(jnp.bfloat16)
    q_stack, head_mask = _precompute_query_constants(params)
    bf = lambda a: a.astype(jnp.bfloat16)

    kernel = functools.partial(attention_avg_pool_kernel, tb=tb, seq=S)

    # weights / constants use a constant index_map -> DMA'd once, VMEM-resident
    const = lambda shape: pl.BlockSpec(shape, lambda i: (0, 0))
    in_specs = [
        pl.BlockSpec((tb * S, D), lambda i: (i, 0)),     # x tile
        const((D, D)),                                   # w_emb
        const((1, D)),                                   # b_emb
        const((2, D)),                                   # ln_emb
        const((D, 2 * D)),                               # w_kv
        const((1, 2 * D)),                               # b_kv
        const((QROWS, D)),                               # q_stack
        const((QROWS, D)),                               # head_mask
        const((D, D)),                                   # w_o
        const((1, D)),                                   # b_o
        const((3 * D, D)),                               # w_out
        const((1, D)),                                   # b_out
        const((2, D)),                                   # ln_out
    ]
    out_spec = pl.BlockSpec((tb, D), lambda i: (i, 0))

    y = pl.pallas_call(
        kernel,
        out_shape=jax.ShapeDtypeStruct((BG, D), jnp.float32),
        grid_spec=pltpu.PrefetchScalarGridSpec(
            num_scalar_prefetch=0,
            grid=grid,
            in_specs=in_specs,
            out_specs=out_spec),
        compiler_params=pltpu.CompilerParams(
            dimension_semantics=("parallel",)),          # 2-TC sharding on v7x
    )(x2d,
      bf(params["w_emb"]), params["b_emb"], params["ln_emb"],
      bf(params["w_kv"]), params["b_kv"],
      q_stack, head_mask,
      bf(params["w_o"]), params["b_o"],
      bf(params["w_out"]), params["b_out"], params["ln_out"])

    if BG != bs:
        y = y.reshape(bs, -1, D)
    return y


# ---------------- deterministic parameter init --------------------------------
def _linear(key, fan_in, w_shape, b_shape):
    kw, kb = jax.random.split(key)
    w = jax.random.normal(kw, w_shape, jnp.float32) * (1.0 / math.sqrt(fan_in))
    b = jax.random.normal(kb, b_shape, jnp.float32) * 0.02
    return w, b


def _ln_params(d):
    return jnp.concatenate([jnp.ones((1, d), jnp.float32),
                            jnp.zeros((1, d), jnp.float32)], axis=0)


def init_attention_avg_pool_params(key, d=D_MODEL):
    ks = jax.random.split(key, 6)
    query = jax.random.normal(ks[0], (NQ, d), jnp.float32)
    w_emb, b_emb = _linear(ks[1], d, (d, d), (1, d))
    w_q, b_q = _linear(ks[2], d, (d, d), (1, d))
    w_kv, b_kv = _linear(ks[3], d, (d, 2 * d), (1, 2 * d))
    w_o, b_o = _linear(ks[4], d, (d, d), (1, d))
    w_out, b_out = _linear(ks[5], 3 * d, (3 * d, d), (1, d))
    return dict(query=query,
                w_emb=w_emb, b_emb=b_emb, ln_emb=_ln_params(d),
                w_q=w_q, b_q=b_q, w_kv=w_kv, b_kv=b_kv, w_o=w_o, b_o=b_o,
                w_out=w_out, b_out=b_out, ln_out=_ln_params(d))


# ---------------- demo ---------------------------------------------------------
if __name__ == "__main__":
    key = jax.random.PRNGKey(0)
    k_par, k_x = jax.random.split(key)

    bs, G, S = 2, 8, 8                      # 4-D input path: (bs, G, S, d_model)
    params = init_attention_avg_pool_params(k_par)
    x = jax.random.normal(k_x, (bs, G, S, D_MODEL), jnp.float32)

    y = attention_avg_pool_forward(params, x, block_bg=8)   # BG=16 -> grid=(2,)
    y = jax.block_until_ready(y)

    assert y.shape == (bs, G, D_MODEL), y.shape
    assert bool(jnp.all(jnp.isfinite(y)))
    print("KERNEL_OK")
</pallas_src>

<mosaic_0001>
module attributes {stable_mosaic.version = 11 : i64} {
  func.func @attention_avg_pool_kernel(%arg0: i32, %arg1: memref<64x128xbf16, #tpu.memory_space<vmem>>, %arg2: memref<128x128xbf16, #tpu.memory_space<vmem>>, %arg3: memref<1x128xf32, #tpu.memory_space<vmem>>, %arg4: memref<2x128xf32, #tpu.memory_space<vmem>>, %arg5: memref<128x256xbf16, #tpu.memory_space<vmem>>, %arg6: memref<1x256xf32, #tpu.memory_space<vmem>>, %arg7: memref<16x128xbf16, #tpu.memory_space<vmem>>, %arg8: memref<16x128xf32, #tpu.memory_space<vmem>>, %arg9: memref<128x128xbf16, #tpu.memory_space<vmem>>, %arg10: memref<1x128xf32, #tpu.memory_space<vmem>>, %arg11: memref<384x128xbf16, #tpu.memory_space<vmem>>, %arg12: memref<1x128xf32, #tpu.memory_space<vmem>>, %arg13: memref<2x128xf32, #tpu.memory_space<vmem>>, %arg14: memref<8x128xf32, #tpu.memory_space<vmem>>) attributes {dimension_semantics = [#tpu.dimension_semantics<parallel>], iteration_bounds = array<i64: 2>, scalar_prefetch = 0 : i64, scratch_operands = 0 : i64, tpu.core_type = #tpu.core_type<tc>, window_params = [{transform_indices = @transform_0, window_bounds = array<i64: 64, 128>}, {pipeline_mode = #tpu.pipeline_mode<synchronous>, transform_indices = @transform_1, window_bounds = array<i64: 128, 128>}, {pipeline_mode = #tpu.pipeline_mode<synchronous>, transform_indices = @transform_2, window_bounds = array<i64: 1, 128>}, {pipeline_mode = #tpu.pipeline_mode<synchronous>, transform_indices = @transform_3, window_bounds = array<i64: 2, 128>}, {pipeline_mode = #tpu.pipeline_mode<synchronous>, transform_indices = @transform_4, window_bounds = array<i64: 128, 256>}, {pipeline_mode = #tpu.pipeline_mode<synchronous>, transform_indices = @transform_5, window_bounds = array<i64: 1, 256>}, {pipeline_mode = #tpu.pipeline_mode<synchronous>, transform_indices = @transform_6, window_bounds = array<i64: 16, 128>}, {pipeline_mode = #tpu.pipeline_mode<synchronous>, transform_indices = @transform_7, window_bounds = array<i64: 16, 128>}, {pipeline_mode = #tpu.pipeline_mode<synchronous>, transform_indices = @transform_8, window_bounds = array<i64: 128, 128>}, {pipeline_mode = #tpu.pipeline_mode<synchronous>, transform_indices = @transform_9, window_bounds = array<i64: 1, 128>}, {pipeline_mode = #tpu.pipeline_mode<synchronous>, transform_indices = @transform_10, window_bounds = array<i64: 384, 128>}, {pipeline_mode = #tpu.pipeline_mode<synchronous>, transform_indices = @transform_11, window_bounds = array<i64: 1, 128>}, {pipeline_mode = #tpu.pipeline_mode<synchronous>, transform_indices = @transform_12, window_bounds = array<i64: 2, 128>}, {transform_indices = @transform_13, window_bounds = array<i64: 8, 128>}]} {
    %c0 = arith.constant 0 : index
    %c0_0 = arith.constant 0 : index
    %0 = vector.load %arg1[%c0, %c0_0] : memref<64x128xbf16, #tpu.memory_space<vmem>>, vector<64x128xbf16>
    %c0_1 = arith.constant 0 : index
    %c0_2 = arith.constant 0 : index
    %1 = vector.load %arg2[%c0_1, %c0_2] : memref<128x128xbf16, #tpu.memory_space<vmem>>, vector<128x128xbf16>
    %cst = arith.constant dense<0.000000e+00> : vector<64x128xf32>
    %2 = tpu.matmul %0, %1, %cst {dimension_numbers = #tpu.dot_dimension_numbers<[1], [0], [0], [1], [0, 0, 1, 1], [], []>} : vector<64x128xbf16>, vector<128x128xbf16>, vector<64x128xf32> -> vector<64x128xf32>
    %c0_3 = arith.constant 0 : index
    %c0_4 = arith.constant 0 : index
    %3 = vector.load %arg3[%c0_3, %c0_4] : memref<1x128xf32, #tpu.memory_space<vmem>>, vector<1x128xf32>
    %4 = vector.broadcast %3 : vector<1x128xf32> to vector<64x128xf32>
    %5 = arith.addf %2, %4 : vector<64x128xf32>
    %c0_5 = arith.constant 0 : index
    %c0_6 = arith.constant 0 : index
    %6 = vector.load %arg4[%c0_5, %c0_6] : memref<2x128xf32, #tpu.memory_space<vmem>>, vector<1x128xf32>
    %c1 = arith.constant 1 : index
    %c0_7 = arith.constant 0 : index
    %7 = vector.load %arg4[%c1, %c0_7] : memref<2x128xf32, #tpu.memory_space<vmem>>, vector<1x128xf32>
    %cst_8 = arith.constant dense<0.000000e+00> : vector<64xf32>
    %8 = vector.multi_reduction <add>, %5, %cst_8 [1] : vector<64x128xf32> to vector<64xf32>
    %9 = vector.shape_cast %8 : vector<64xf32> to vector<64x1xf32>
    %cst_9 = arith.constant 1.280000e+02 : f32
    %10 = vector.broadcast %cst_9 : f32 to vector<64x1xf32>
    %11 = arith.divf %9, %10 : vector<64x1xf32>
    %12 = vector.broadcast %11 : vector<64x1xf32> to vector<64x128xf32>
    %13 = arith.subf %5, %12 : vector<64x128xf32>
    %14 = arith.mulf %13, %13 : vector<64x128xf32>
    %cst_10 = arith.constant dense<0.000000e+00> : vector<64xf32>
    %15 = vector.multi_reduction <add>, %14, %cst_10 [1] : vector<64x128xf32> to vector<64xf32>
    %16 = vector.shape_cast %15 : vector<64xf32> to vector<64x1xf32>
    %cst_11 = arith.constant 1.280000e+02 : f32
    %17 = vector.broadcast %cst_11 : f32 to vector<64x1xf32>
    %18 = arith.divf %16, %17 : vector<64x1xf32>
    %19 = vector.broadcast %11 : vector<64x1xf32> to vector<64x128xf32>
    %20 = arith.subf %5, %19 : vector<64x128xf32>
    %cst_12 = arith.constant 9.99999974E-6 : f32
    %21 = vector.broadcast %cst_12 : f32 to vector<64x1xf32>
    %22 = arith.addf %18, %21 : vector<64x1xf32>
    %23 = math.rsqrt %22 : vector<64x1xf32>
    %24 = vector.broadcast %23 : vector<64x1xf32> to vector<64x128xf32>
    %25 = arith.mulf %20, %24 : vector<64x128xf32>
    %26 = vector.broadcast %6 : vector<1x128xf32> to vector<64x128xf32>
    %27 = arith.mulf %25, %26 : vector<64x128xf32>
    %28 = vector.broadcast %7 : vector<1x128xf32> to vector<64x128xf32>
    %29 = arith.addf %27, %28 : vector<64x128xf32>
    %cst_13 = arith.constant 5.000000e-01 : f32
    %30 = vector.broadcast %cst_13 : f32 to vector<64x128xf32>
    %31 = arith.mulf %30, %29 : vector<64x128xf32>
    %cst_14 = arith.constant 4.471500e-02 : f32
    %32 = vector.broadcast %cst_14 : f32 to vector<64x128xf32>
    %33 = arith.mulf %32, %29 : vector<64x128xf32>
    %34 = arith.mulf %33, %29 : vector<64x128xf32>
    %35 = arith.mulf %34, %29 : vector<64x128xf32>
    %36 = arith.addf %29, %35 : vector<64x128xf32>
    %cst_15 = arith.constant 0.797884583 : f32
    %37 = vector.broadcast %cst_15 : f32 to vector<64x128xf32>
    %38 = arith.mulf %37, %36 : vector<64x128xf32>
    %39 = math.tanh %38 : vector<64x128xf32>
    %cst_16 = arith.constant 1.000000e+00 : f32
    %40 = vector.broadcast %cst_16 : f32 to vector<64x128xf32>
    %41 = arith.addf %40, %39 : vector<64x128xf32>
    %42 = arith.mulf %31, %41 : vector<64x128xf32>
    %43 = arith.truncf %42 : vector<64x128xf32> to vector<64x128xbf16>
    %c0_17 = arith.constant 0 : index
    %c0_18 = arith.constant 0 : index
    %44 = vector.load %arg5[%c0_17, %c0_18] : memref<128x256xbf16, #tpu.memory_space<vmem>>, vector<128x256xbf16>
    %cst_19 = arith.constant dense<0.000000e+00> : vector<64x256xf32>
    %45 = tpu.matmul %43, %44, %cst_19 {dimension_numbers = #tpu.dot_dimension_numbers<[1], [0], [0], [1], [0, 0, 1, 1], [], []>} : vector<64x128xbf16>, vector<128x256xbf16>, vector<64x256xf32> -> vector<64x256xf32>
    %c0_20 = arith.constant 0 : index
    %c0_21 = arith.constant 0 : index
    %46 = vector.load %arg6[%c0_20, %c0_21] : memref<1x256xf32, #tpu.memory_space<vmem>>, vector<1x256xf32>
    %47 = vector.broadcast %46 : vector<1x256xf32> to vector<64x256xf32>
    %48 = arith.addf %45, %47 : vector<64x256xf32>
    %49 = vector.extract_strided_slice %48 {offsets = [0, 0], sizes = [64, 128], strides = [1, 1]} : vector<64x256xf32> to vector<64x128xf32>
    %50 = arith.truncf %49 : vector<64x128xf32> to vector<64x128xbf16>
    %51 = vector.shape_cast %50 : vector<64x128xbf16> to vector<8x8x128xbf16>
    %52 = vector.extract_strided_slice %48 {offsets = [0, 128], sizes = [64, 128], strides = [1, 1]} : vector<64x256xf32> to vector<64x128xf32>
    %53 = arith.truncf %52 : vector<64x128xf32> to vector<64x128xbf16>
    %54 = vector.shape_cast %53 : vector<64x128xbf16> to vector<8x8x128xbf16>
    %c0_22 = arith.constant 0 : index
    %c0_23 = arith.constant 0 : index
    %55 = vector.load %arg7[%c0_22, %c0_23] : memref<16x128xbf16, #tpu.memory_space<vmem>>, vector<16x128xbf16>
    %56 = vector.shape_cast %55 : vector<16x128xbf16> to vector<1x16x128xbf16>
    %57 = vector.shape_cast %56 : vector<1x16x128xbf16> to vector<1x16x128xbf16>
    %58 = vector.broadcast %57 : vector<1x16x128xbf16> to vector<8x16x128xbf16>
    "tpu.trace_start"() <{level = 10 : i32, message = "bqd,bkd->bqk"}> : () -> ()
    %cst_24 = arith.constant dense<0.000000e+00> : vector<8x16x8xf32>
    %59 = tpu.matmul %58, %51, %cst_24 {dimension_numbers = #tpu.dot_dimension_numbers<[2], [2], [1], [1], [0, 0, 0, 1, 1, 1], [0], [0]>} : vector<8x16x128xbf16>, vector<8x8x128xbf16>, vector<8x16x8xf32> -> vector<8x16x8xf32>
    "tpu.trace_stop"() : () -> ()
    %cst_25 = arith.constant dense<0xFF800000> : vector<8x16xf32>
    %60 = vector.multi_reduction <maximumf>, %59, %cst_25 [2] : vector<8x16x8xf32> to vector<8x16xf32>
    %61 = vector.shape_cast %60 : vector<8x16xf32> to vector<8x16x1xf32>
    %62 = vector.broadcast %61 : vector<8x16x1xf32> to vector<8x16x8xf32>
    %63 = arith.subf %59, %62 : vector<8x16x8xf32>
    %64 = math.exp %63 : vector<8x16x8xf32>
    %cst_26 = arith.constant dense<0.000000e+00> : vector<8x16xf32>
    %65 = vector.multi_reduction <add>, %64, %cst_26 [2] : vector<8x16x8xf32> to vector<8x16xf32>
    %66 = vector.shape_cast %65 : vector<8x16xf32> to vector<8x16x1xf32>
    %67 = tpu.reciprocal %66 {approx = true} : vector<8x16x1xf32> -> vector<8x16x1xf32>
    %68 = vector.broadcast %67 : vector<8x16x1xf32> to vector<8x16x8xf32>
    %69 = arith.mulf %64, %68 : vector<8x16x8xf32>
    %70 = arith.truncf %69 : vector<8x16x8xf32> to vector<8x16x8xbf16>
    "tpu.trace_start"() <{level = 10 : i32, message = "bqk,bkd->bqd"}> : () -> ()
    %cst_27 = arith.constant dense<0.000000e+00> : vector<8x16x128xf32>
    %71 = tpu.matmul %70, %54, %cst_27 {dimension_numbers = #tpu.dot_dimension_numbers<[2], [1], [1], [2], [0, 0, 0, 1, 1, 2], [0], [0]>} : vector<8x16x8xbf16>, vector<8x8x128xbf16>, vector<8x16x128xf32> -> vector<8x16x128xf32>
    "tpu.trace_stop"() : () -> ()
    %c0_28 = arith.constant 0 : index
    %c0_29 = arith.constant 0 : index
    %72 = vector.load %arg8[%c0_28, %c0_29] : memref<16x128xf32, #tpu.memory_space<vmem>>, vector<16x128xf32>
    %73 = vector.shape_cast %72 : vector<16x128xf32> to vector<1x16x128xf32>
    %74 = vector.broadcast %73 : vector<1x16x128xf32> to vector<8x16x128xf32>
    %75 = arith.mulf %71, %74 : vector<8x16x128xf32>
    %76 = vector.extract_strided_slice %75 {offsets = [0, 0, 0], sizes = [8, 3, 128], strides = [1, 1, 1]} : vector<8x16x128xf32> to vector<8x3x128xf32>
    %77 = vector.extract_strided_slice %75 {offsets = [0, 3, 0], sizes = [8, 3, 128], strides = [1, 1, 1]} : vector<8x16x128xf32> to vector<8x3x128xf32>
    %78 = arith.addf %76, %77 : vector<8x3x128xf32>
    %79 = vector.extract_strided_slice %75 {offsets = [0, 6, 0], sizes = [8, 3, 128], strides = [1, 1, 1]} : vector<8x16x128xf32> to vector<8x3x128xf32>
    %80 = arith.addf %78, %79 : vector<8x3x128xf32>
    %81 = vector.extract_strided_slice %75 {offsets = [0, 9, 0], sizes = [8, 3, 128], strides = [1, 1, 1]} : vector<8x16x128xf32> to vector<8x3x128xf32>
    %82 = arith.addf %80, %81 : vector<8x3x128xf32>
    %83 = vector.shape_cast %82 : vector<8x3x128xf32> to vector<24x128xf32>
    %84 = arith.truncf %83 : vector<24x128xf32> to vector<24x128xbf16>
    %c0_30 = arith.constant 0 : index
    %c0_31 = arith.constant 0 : index
    %85 = vector.load %arg9[%c0_30, %c0_31] : memref<128x128xbf16, #tpu.memory_space<vmem>>, vector<128x128xbf16>
    %cst_32 = arith.constant dense<0.000000e+00> : vector<24x128xf32>
    %86 = tpu.matmul %84, %85, %cst_32 {dimension_numbers = #tpu.dot_dimension_numbers<[1], [0], [0], [1], [0, 0, 1, 1], [], []>} : vector<24x128xbf16>, vector<128x128xbf16>, vector<24x128xf32> -> vector<24x128xf32>
    %c0_33 = arith.constant 0 : index
    %c0_34 = arith.constant 0 : index
    %87 = vector.load %arg10[%c0_33, %c0_34] : memref<1x128xf32, #tpu.memory_space<vmem>>, vector<1x128xf32>
    %88 = vector.broadcast %87 : vector<1x128xf32> to vector<24x128xf32>
    %89 = arith.addf %86, %88 : vector<24x128xf32>
    %90 = vector.shape_cast %89 : vector<24x128xf32> to vector<8x3x128xf32>
    %91 = vector.extract_strided_slice %90 {offsets = [0, 0, 0], sizes = [8, 1, 128], strides = [1, 1, 1]} : vector<8x3x128xf32> to vector<8x1x128xf32>
    %92 = vector.shape_cast %91 : vector<8x1x128xf32> to vector<8x128xf32>
    %93 = vector.extract_strided_slice %90 {offsets = [0, 1, 0], sizes = [8, 1, 128], strides = [1, 1, 1]} : vector<8x3x128xf32> to vector<8x1x128xf32>
    %94 = vector.shape_cast %93 : vector<8x1x128xf32> to vector<8x128xf32>
    %95 = vector.extract_strided_slice %90 {offsets = [0, 2, 0], sizes = [8, 1, 128], strides = [1, 1, 1]} : vector<8x3x128xf32> to vector<8x1x128xf32>
    %96 = vector.shape_cast %95 : vector<8x1x128xf32> to vector<8x128xf32>
    %97 = tpu.concatenate %92, %94, %96 in 1 : vector<8x128xf32>, vector<8x128xf32>, vector<8x128xf32> -> vector<8x384xf32>
    %98 = arith.truncf %97 : vector<8x384xf32> to vector<8x384xbf16>
    %c0_35 = arith.constant 0 : index
    %c0_36 = arith.constant 0 : index
    %99 = vector.load %arg11[%c0_35, %c0_36] : memref<384x128xbf16, #tpu.memory_space<vmem>>, vector<384x128xbf16>
    %cst_37 = arith.constant dense<0.000000e+00> : vector<8x128xf32>
    %100 = tpu.matmul %98, %99, %cst_37 {dimension_numbers = #tpu.dot_dimension_numbers<[1], [0], [0], [1], [0, 0, 1, 1], [], []>} : vector<8x384xbf16>, vector<384x128xbf16>, vector<8x128xf32> -> vector<8x128xf32>
    %c0_38 = arith.constant 0 : index
    %c0_39 = arith.constant 0 : index
    %101 = vector.load %arg12[%c0_38, %c0_39] : memref<1x128xf32, #tpu.memory_space<vmem>>, vector<1x128xf32>
    %102 = vector.broadcast %101 : vector<1x128xf32> to vector<8x128xf32>
    %103 = arith.addf %100, %102 : vector<8x128xf32>
    %c0_40 = arith.constant 0 : index
    %c0_41 = arith.constant 0 : index
    %104 = vector.load %arg13[%c0_40, %c0_41] : memref<2x128xf32, #tpu.memory_space<vmem>>, vector<1x128xf32>
    %c1_42 = arith.constant 1 : index
    %c0_43 = arith.constant 0 : index
    %105 = vector.load %arg13[%c1_42, %c0_43] : memref<2x128xf32, #tpu.memory_space<vmem>>, vector<1x128xf32>
    %cst_44 = arith.constant dense<0.000000e+00> : vector<8xf32>
    %106 = vector.multi_reduction <add>, %103, %cst_44 [1] : vector<8x128xf32> to vector<8xf32>
    %107 = vector.shape_cast %106 : vector<8xf32> to vector<8x1xf32>
    %cst_45 = arith.constant 1.280000e+02 : f32
    %108 = vector.broadcast %cst_45 : f32 to vector<8x1xf32>
    %109 = arith.divf %107, %108 : vector<8x1xf32>
    %110 = vector.broadcast %109 : vector<8x1xf32> to vector<8x128xf32>
    %111 = arith.subf %103, %110 : vector<8x128xf32>
    %112 = arith.mulf %111, %111 : vector<8x128xf32>
    %cst_46 = arith.constant dense<0.000000e+00> : vector<8xf32>
    %113 = vector.multi_reduction <add>, %112, %cst_46 [1] : vector<8x128xf32> to vector<8xf32>
    %114 = vector.shape_cast %113 : vector<8xf32> to vector<8x1xf32>
    %cst_47 = arith.constant 1.280000e+02 : f32
    %115 = vector.broadcast %cst_47 : f32 to vector<8x1xf32>
    %116 = arith.divf %114, %115 : vector<8x1xf32>
    %117 = vector.broadcast %109 : vector<8x1xf32> to vector<8x128xf32>
    %118 = arith.subf %103, %117 : vector<8x128xf32>
    %cst_48 = arith.constant 9.99999974E-6 : f32
    %119 = vector.broadcast %cst_48 : f32 to vector<8x1xf32>
    %120 = arith.addf %116, %119 : vector<8x1xf32>
    %121 = math.rsqrt %120 : vector<8x1xf32>
    %122 = vector.broadcast %121 : vector<8x1xf32> to vector<8x128xf32>
    %123 = arith.mulf %118, %122 : vector<8x128xf32>
    %124 = vector.broadcast %104 : vector<1x128xf32> to vector<8x128xf32>
    %125 = arith.mulf %123, %124 : vector<8x128xf32>
    %126 = vector.broadcast %105 : vector<1x128xf32> to vector<8x128xf32>
    %127 = arith.addf %125, %126 : vector<8x128xf32>
    %cst_49 = arith.constant 5.000000e-01 : f32
    %128 = vector.broadcast %cst_49 : f32 to vector<8x128xf32>
    %129 = arith.mulf %128, %127 : vector<8x128xf32>
    %cst_50 = arith.constant 4.471500e-02 : f32
    %130 = vector.broadcast %cst_50 : f32 to vector<8x128xf32>
    %131 = arith.mulf %130, %127 : vector<8x128xf32>
    %132 = arith.mulf %131, %127 : vector<8x128xf32>
    %133 = arith.mulf %132, %127 : vector<8x128xf32>
    %134 = arith.addf %127, %133 : vector<8x128xf32>
    %cst_51 = arith.constant 0.797884583 : f32
    %135 = vector.broadcast %cst_51 : f32 to vector<8x128xf32>
    %136 = arith.mulf %135, %134 : vector<8x128xf32>
    %137 = math.tanh %136 : vector<8x128xf32>
    %cst_52 = arith.constant 1.000000e+00 : f32
    %138 = vector.broadcast %cst_52 : f32 to vector<8x128xf32>
    %139 = arith.addf %138, %137 : vector<8x128xf32>
    %140 = arith.mulf %129, %139 : vector<8x128xf32>
    %c0_53 = arith.constant 0 : index
    %c0_54 = arith.constant 0 : index
    %141 = vector.load %arg14[%c0_53, %c0_54] : memref<8x128xf32, #tpu.memory_space<vmem>>, vector<8x128xf32>
    tpu.vector_store %arg14[%c0_53, %c0_54], %140 {strides = array<i32>} : memref<8x128xf32, #tpu.memory_space<vmem>>, vector<8x128xf32>,
    return
  }
  func.func @transform_0(%arg0: i32) -> (i32, i32) {
    %c0_i32 = arith.constant 0 : i32
    %c0_i32_0 = arith.constant 0 : i32
    return %arg0, %c0_i32 : i32, i32
  }
  func.func @transform_1(%arg0: i32) -> (i32, i32) {
    %c0_i32 = arith.constant 0 : i32
    %c0_i32_0 = arith.constant 0 : i32
    %c0_i32_1 = arith.constant 0 : i32
    return %c0_i32, %c0_i32_0 : i32, i32
  }
  func.func @transform_2(%arg0: i32) -> (i32, i32) {
    %c0_i32 = arith.constant 0 : i32
    %c0_i32_0 = arith.constant 0 : i32
    %c0_i32_1 = arith.constant 0 : i32
    return %c0_i32, %c0_i32_0 : i32, i32
  }
  func.func @transform_3(%arg0: i32) -> (i32, i32) {
    %c0_i32 = arith.constant 0 : i32
    %c0_i32_0 = arith.constant 0 : i32
    %c0_i32_1 = arith.constant 0 : i32
    return %c0_i32, %c0_i32_0 : i32, i32
  }
  func.func @transform_4(%arg0: i32) -> (i32, i32) {
    %c0_i32 = arith.constant 0 : i32
    %c0_i32_0 = arith.constant 0 : i32
    %c0_i32_1 = arith.constant 0 : i32
    return %c0_i32, %c0_i32_0 : i32, i32
  }
  func.func @transform_5(%arg0: i32) -> (i32, i32) {
    %c0_i32 = arith.constant 0 : i32
    %c0_i32_0 = arith.constant 0 : i32
    %c0_i32_1 = arith.constant 0 : i32
    return %c0_i32, %c0_i32_0 : i32, i32
  }
  func.func @transform_6(%arg0: i32) -> (i32, i32) {
    %c0_i32 = arith.constant 0 : i32
    %c0_i32_0 = arith.constant 0 : i32
    %c0_i32_1 = arith.constant 0 : i32
    return %c0_i32, %c0_i32_0 : i32, i32
  }
  func.func @transform_7(%arg0: i32) -> (i32, i32) {
    %c0_i32 = arith.constant 0 : i32
    %c0_i32_0 = arith.constant 0 : i32
    %c0_i32_1 = arith.constant 0 : i32
    return %c0_i32, %c0_i32_0 : i32, i32
  }
  func.func @transform_8(%arg0: i32) -> (i32, i32) {
    %c0_i32 = arith.constant 0 : i32
    %c0_i32_0 = arith.constant 0 : i32
    %c0_i32_1 = arith.constant 0 : i32
    return %c0_i32, %c0_i32_0 : i32, i32
  }
  func.func @transform_9(%arg0: i32) -> (i32, i32) {
    %c0_i32 = arith.constant 0 : i32
    %c0_i32_0 = arith.constant 0 : i32
    %c0_i32_1 = arith.constant 0 : i32
    return %c0_i32, %c0_i32_0 : i32, i32
  }
  func.func @transform_10(%arg0: i32) -> (i32, i32) {
    %c0_i32 = arith.constant 0 : i32
    %c0_i32_0 = arith.constant 0 : i32
    %c0_i32_1 = arith.constant 0 : i32
    return %c0_i32, %c0_i32_0 : i32, i32
  }
  func.func @transform_11(%arg0: i32) -> (i32, i32) {
    %c0_i32 = arith.constant 0 : i32
    %c0_i32_0 = arith.constant 0 : i32
    %c0_i32_1 = arith.constant 0 : i32
    return %c0_i32, %c0_i32_0 : i32, i32
  }
  func.func @transform_12(%arg0: i32) -> (i32, i32) {
    %c0_i32 = arith.constant 0 : i32
    %c0_i32_0 = arith.constant 0 : i32
    %c0_i32_1 = arith.constant 0 : i32
    return %c0_i32, %c0_i32_0 : i32, i32
  }
  func.func @transform_13(%arg0: i32) -> (i32, i32) {
    %c0_i32 = arith.constant 0 : i32
    %c0_i32_0 = arith.constant 0 : i32
    return %arg0, %c0_i32 : i32, i32
  }
}

</mosaic_0001>

<bundles_post_ra>
// kernel: tpu_custom_call.1
= control target key start
LH: loop header
LB: loop body
LE: loop exit
PB: predicated region body
PF: predicated region fallthrough
CT: control target
= control target key end

     0   :  { %s5279_s0 = inlined_call_operand.hbm [shape: bf16[128,128], index: 0, kind: input, shape index: {}]   ;;  %s5280_s1 = inlined_call_operand.hbm [shape: bf16[128,128], index: 1, kind: input, shape index: {}]   ;;  %s5281_s2 = inlined_call_operand.hbm [shape: f32[1,128], index: 2, kind: input, shape index: {}]   ;;  %s5282_s3 = inlined_call_operand.vmem [shape: f32[2,128], index: 3, kind: input, shape index: {}]   ;;  %s5283_s4 = inlined_call_operand.hbm [shape: bf16[128,256], index: 4, kind: input, shape index: {}]   ;;  %s5284_s5 = inlined_call_operand.hbm [shape: f32[1,256], index: 5, kind: input, shape index: {}]   ;;  %s5285_s6 = inlined_call_operand.vmem [shape: bf16[16,128], index: 6, kind: input, shape index: {}]   ;;  %s5286_s7 = inlined_call_operand.vmem [shape: f32[16,128], index: 7, kind: input, shape index: {}]   ;;  %s5287_s8 = inlined_call_operand.hbm [shape: bf16[128,128], index: 8, kind: input, shape index: {}]   ;;  %s5288_s9 = inlined_call_operand.vmem [shape: f32[1,128], index: 9, kind: input, shape index: {}]   ;;  %s5289_s10 = inlined_call_operand.hbm [shape: bf16[384,128], index: 10, kind: input, shape index: {}]   ;;  %s5290_s11 = inlined_call_operand.vmem [shape: f32[1,128], index: 11, kind: input, shape index: {}]   ;;  %s5291_s12 = inlined_call_operand.vmem [shape: f32[2,128], index: 12, kind: input, shape index: {}]   ;;  %s5292_s13 = inlined_call_operand.hbm [shape: f32[16,128], index: 13, kind: output, shape index: {}]  }
   0x1   :  { %5302 = sst [smem:[#allocation20_spill]] %s5280_s1 }
   0x2   :  { %5303 = sst [smem:[#allocation21_spill]] %s5286_s7 }
   0x3   :  { %5304 = sst [smem:[#allocation22_spill]] %s5288_s9 }
   0x4   :  { %5305 = sst [smem:[#allocation23_spill]] %s5290_s11 }
   0x5   :  { %5306 = sst [smem:[#allocation24_spill]] %s5291_s12 }
   0x6   :  { %5307 = sst [smem:[#allocation25_spill]] %s5292_s13 }
   0x7   :  { %18 = vsyncpa [#allocation3], 0 }
   0x8   :  { %20 = vsyncpa [#allocation3 + $0x1], 0 }
   0x9   :  { %21 = vsyncpa [#allocation6], 0 }
   0xa   :  { %22 = vsyncpa [#allocation9], 0 }
   0xb   :  { %23 = vsyncpa [#allocation12], 0 }
   0xc   :  { %24 = vsyncpa [#allocation4], 0 }
   0xd   :  { %26 = vsyncpa [#allocation4 + $0x1], 0  ;;  %s4409_s25 = smov 0   ;;  %s4411_s26 = smov 0  }
   0xe   :  { %s4413_s27 = smov 0   ;;  %s4415_s28 = smov 0  }
   0xf LB: > { %s4323_s29 = smov [#allocation5]   ;;  %s4430_s14 = sadd.s32 4294967295, %s4321_s28   ;;  %s4321_s28 = sphi %s4415_s28, %s5338_s28   ;;  %s4317_s27 = sphi %s4413_s27, %s5337_s27   ;;  %s4313_s26 = sphi %s4411_s26, %s5336_s26   ;;  %s4309_s25 = sphi %s4409_s25, %s5335_s25  }
  0x10   : > { %s353_s30 = sshll.u32 %s4323_s29, 4  ;;  %p3381_p0 = scmp.ge.s32.totalorder %s4321_s28, 1  ;;  %s4435_s30 = int_to_ptr.vmem [resolvable:$true] %s353_s30 }
  0x11   : > { %p5298_p1 = scmp.eq.s32.totalorder %s4430_s14, 0  ;;  %p341_p2 = scmp.lt.s32.totalorder %s4321_s28, 3 }
  0x12   : > { %s4324_s16 = smov [#allocation8]   ;;  %s4325_s19 = smov [#allocation11]  }
  0x13   : > { %p4437_p3 = pnand %p3381_p0, %p341_p2  ;;  %s380_s17 = sshll.u32 %s4324_s16, 4  ;;  %s4450_s17 = int_to_ptr.vmem [resolvable:$true] %s380_s17 }
  0x14   : > { %s4452_s20 = sshll.u32 %s4325_s19, 4  ;;  %s5310_s1 = sld [smem:[#allocation20_spill]]  ;;  %s411_s20 = int_to_ptr.vmem [resolvable:$true] %s4452_s20 }
  0x15   : > { %s5308_s15 = scalar_select %p4437_p3, 1, 0 }
  0x16   : > { %p3789_p5 = pneg %p4437_p3 }
  0x18   : > { %p4446_p6 = pnand %p3789_p5, %p5298_p1 }
  0x1a   : > { %s4045_s23 = scalar_lea.hbm %s5310_s1, 1024  ;;  %p4462_p8 = pneg %p4446_p6 }
  0x1b   : > { %p4046_p7 = scmp.ne.s32.totalorder %s5310_s1, %s4045_s23  ;;  %p4052_p11 = scmp.lt.u32.totalorder %s4045_s23, %s5310_s1 }
  0x1d   : > { %p4048_p9 = pnand %p4462_p8, %p4046_p7 }
  0x1f   : > { %p4049_p10 = pneg %p4048_p9 }
  0x21   : > { %p4054_p12 = pnand %p4052_p11, %p4049_p10 }
  0x23   : > { %4057 = shalt.err (!%p4054_p12)
}
  0x24   : > { %s4058_s21 = scalar_lea.vmem %s4435_s30, 1024  ;;  %p4066_p5 = scmp.lt.s32.totalorder %s4435_s30, %s4435_s30 }
  0x25   : > { %p4059_p13 = scmp.ne.s32.totalorder %s4435_s30, %s4058_s21  ;;  %p4067_p4 = scmp.lt.s32.totalorder %s4058_s21, %s4058_s21 }
  0x27   : > { %p4061_p0 = pnand %p4059_p13, %p4462_p8  ;;  %p4068_p7 = por %p4067_p4, %p4066_p5 }
  0x29   : > { %p4062_p2 = pneg %p4061_p0 }
  0x2b   : > { %p4069_p9 = pnand %p4068_p7, %p4062_p2 }
  0x2d   : > { %4072 = shalt.err (!%p4069_p9)
}
  0x2e   : > { %s5296_s22 = smov 64   ;;  %s5300_s13 = smov 4  }
  0x2f   : > { %3792 = dma.hbm_to_vmem [thread:$0]  (!%p4446_p6), %s5310_s1, 1024, %s4435_s30, [#allocation6], %s5296_s22, %s5296_s22, %s5300_s13  }
  0x30   : > { %s4073_s21 = scalar_lea.hbm %s5283_s4, 2048 }
  0x31   : > { %p4074_p4 = scmp.ne.s32.totalorder %s5283_s4, %s4073_s21  ;;  %p4080_p12 = scmp.lt.u32.totalorder %s4073_s21, %s5283_s4 }
  0x33   : > { %p4076_p10 = pnand %p4074_p4, %p4462_p8 }
  0x35   : > { %p4077_p11 = pneg %p4076_p10 }
  0x37   : > { %p4082_p13 = pnand %p4080_p12, %p4077_p11 }
  0x39   : > { %4085 = shalt.err (!%p4082_p13)
}
  0x3a   : > { %s4086_s30 = scalar_lea.vmem %s4450_s17, 2048  ;;  %p4094_p7 = scmp.lt.s32.totalorder %s4450_s17, %s4450_s17 }
  0x3b   : > { %p4087_p0 = scmp.ne.s32.totalorder %s4450_s17, %s4086_s30  ;;  %p4095_p9 = scmp.lt.s32.totalorder %s4086_s30, %s4086_s30 }
  0x3d   : > { %p4089_p2 = pnand %p4087_p0, %p4462_p8  ;;  %p4096_p4 = por %p4095_p9, %p4094_p7 }
  0x3f   : > { %p4090_p5 = pneg %p4089_p2 }
  0x41   : > { %p4097_p10 = pnand %p4096_p4, %p4090_p5 }
  0x43   : > { %4100 = shalt.err (!%p4097_p10)
}
  0x44   : > { %s4328_s11 = smov 128   ;;  %s4329_s7 = smov 8  }
  0x45   : > { %3798 = dma.hbm_to_vmem [thread:$0]  (!%p4446_p6), %s5283_s4, 2048, %s4450_s17, [#allocation9], %s4328_s11, %s4328_s11, %s4329_s7  }
  0x46   : > { %s4101_s29 = scalar_lea.hbm %s5287_s8, 1024 }
  0x47   : > { %p4102_p11 = scmp.ne.s32.totalorder %s5287_s8, %s4101_s29  ;;  %p4108_p0 = scmp.lt.u32.totalorder %s4101_s29, %s5287_s8 }
  0x49   : > { %p4104_p12 = pnand %p4102_p11, %p4462_p8 }
  0x4b   : > { %p4105_p13 = pneg %p4104_p12 }
  0x4d   : > { %p4110_p2 = pnand %p4108_p0, %p4105_p13 }
  0x4f   : > { %4113 = shalt.err (!%p4110_p2)
}
  0x50   : > { %s4114_s9 = scalar_lea.vmem %s411_s20, 1024  ;;  %p4122_p4 = scmp.lt.s32.totalorder %s411_s20, %s411_s20 }
  0x51   : > { %p4115_p5 = scmp.ne.s32.totalorder %s411_s20, %s4114_s9  ;;  %p4123_p10 = scmp.lt.s32.totalorder %s4114_s9, %s4114_s9 }
  0x53   : > { %p4117_p7 = pnand %p4115_p5, %p4462_p8  ;;  %p4124_p1 = por %p4123_p10, %p4122_p4 }
  0x55   : > { %p4118_p9 = pneg %p4117_p7 }
  0x57   : > { %p4125_p3 = pnand %p4124_p1, %p4118_p9 }
  0x59   : > { %4128 = shalt.err (!%p4125_p3)
}
  0x5a   : > { %s5312_s17 = smov 64   ;;  %s4330_s7 = smov [#allocation7]  }
  0x5b   : > { %3804 = dma.hbm_to_vmem [thread:$0]  (!%p4446_p6), %s5287_s8, 1024, %s411_s20, [#allocation12], %s5312_s17, %s5312_s17, %s5300_s13  }
  0x5c   : > { %s367_s12 = sshll.u32 %s4330_s7, 4  ;;  %s4331_s23 = smov [#allocation10]   ;;  %s368_s12 = int_to_ptr.vmem [resolvable:$true] %s367_s12 }
  0x5d   : > { %s394_s24 = sshll.u32 %s4331_s23, 4  ;;  %s4129_s21 = scalar_lea.hbm %s5281_s2, 16  ;;  %s395_s24 = int_to_ptr.vmem [resolvable:$true] %s394_s24 }
  0x5e   : > { %p4130_p1 = scmp.ne.s32.totalorder %s5281_s2, %s4129_s21  ;;  %p4136_p12 = scmp.lt.u32.totalorder %s4129_s21, %s5281_s2 }
  0x60   : > { %p4132_p3 = pnand %p4130_p1, %p4462_p8 }
  0x62   : > { %p4133_p11 = pneg %p4132_p3 }
  0x64   : > { %p4138_p13 = pnand %p4136_p12, %p4133_p11 }
  0x66   : > { %4141 = shalt.err (!%p4138_p13)
}
  0x67   : > { %s4142_s20 = scalar_lea.vmem %s368_s12, 16  ;;  %s4149_s11 = scalar_lea.vmem %s368_s12, 32 }
  0x68   : > { %p4143_p0 = scmp.ne.s32.totalorder %s368_s12, %s4142_s20  ;;  %p4150_p7 = scmp.lt.s32.totalorder %s368_s12, %s368_s12 }
  0x69   : > { %p4151_p9 = scmp.lt.s32.totalorder %s4149_s11, %s4142_s20 }
  0x6a   : > { %p4145_p2 = pnand %p4143_p0, %p4462_p8 }
  0x6b   : > { %p4152_p4 = por %p4151_p9, %p4150_p7 }
  0x6c   : > { %p4146_p5 = pneg %p4145_p2 }
  0x6e   : > { %p4153_p10 = pnand %p4152_p4, %p4146_p5 }
  0x70   : > { %4156 = shalt.err (!%p4153_p10)
}
  0x71   : > { %3795 = dma.hbm_to_vmem [thread:$0]  (!%p4446_p6), %s5281_s2, 16, %s368_s12, [#allocation6]  }
  0x72   : > { %s4157_s19 = scalar_lea.hbm %s5284_s5, 32 }
  0x73   : > { %p4158_p1 = scmp.ne.s32.totalorder %s5284_s5, %s4157_s19  ;;  %p4164_p12 = scmp.lt.u32.totalorder %s4157_s19, %s5284_s5 }
  0x75   : > { %p4160_p3 = pnand %p4158_p1, %p4462_p8 }
  0x77   : > { %p4161_p11 = pneg %p4160_p3 }
  0x79   : > { %p4166_p13 = pnand %p4164_p12, %p4161_p11 }
  0x7b   : > { %4169 = shalt.err (!%p4166_p13)
}
  0x7c   : > { %s4170_s20 = scalar_lea.vmem %s395_s24, 32  ;;  %p4178_p7 = scmp.lt.s32.totalorder %s395_s24, %s395_s24 }
  0x7d   : > { %p4171_p0 = scmp.ne.s32.totalorder %s395_s24, %s4170_s20  ;;  %p4179_p9 = scmp.lt.s32.totalorder %s4170_s20, %s4170_s20 }
  0x7f   : > { %p4173_p2 = pnand %p4171_p0, %p4462_p8  ;;  %p4180_p4 = por %p4179_p9, %p4178_p7 }
  0x81   : > { %p4174_p5 = pneg %p4173_p2 }
  0x83   : > { %p4181_p10 = pnand %p4180_p4, %p4174_p5 }
  0x85   : > { %4184 = shalt.err (!%p4181_p10)
}
  0x86   : > { %3801 = dma.hbm_to_vmem [thread:$0]  (!%p4446_p6), %s5284_s5, 32, %s395_s24, [#allocation9]  }
  0x87   : > { %s4332_s7 = smov [#allocation13]   ;;  %s4185_s19 = scalar_lea.hbm %s5289_s10, 3072 }
  0x88   : > { %s426_s23 = sshll.u32 %s4332_s7, 4  ;;  %p4186_p1 = scmp.ne.s32.totalorder %s5289_s10, %s4185_s19  ;;  %s427_s23 = int_to_ptr.vmem [resolvable:$true] %s426_s23 }
  0x89   : > { %p4192_p12 = scmp.lt.u32.totalorder %s4185_s19, %s5289_s10 }
  0x8a   : > { %p4188_p3 = pnand %p4186_p1, %p4462_p8 }
  0x8c   : > { %p4189_p11 = pneg %p4188_p3 }
  0x8e   : > { %p4194_p13 = pnand %p4192_p12, %p4189_p11 }
  0x90   : > { %4197 = shalt.err (!%p4194_p13)
}
  0x91   : > { %s4198_s24 = scalar_lea.vmem %s427_s23, 3072  ;;  %p4206_p7 = scmp.lt.s32.totalorder %s427_s23, %s427_s23 }
  0x92   : > { %p4199_p0 = scmp.ne.s32.totalorder %s427_s23, %s4198_s24  ;;  %p4207_p9 = scmp.lt.s32.totalorder %s4198_s24, %s4198_s24 }
  0x94   : > { %p4201_p2 = pnand %p4199_p0, %p4462_p8  ;;  %p4208_p4 = por %p4207_p9, %p4206_p7 }
  0x96   : > { %p4202_p5 = pneg %p4201_p2 }
  0x98   : > { %p4209_p10 = pnand %p4208_p4, %p4202_p5 }
  0x9a   : > { %4212 = shalt.err (!%p4209_p10)
}
  0x9b   : > { %3807 = dma.hbm_to_vmem [thread:$0]  (!%p4446_p6), %s5289_s10, 3072, %s427_s23, [#allocation12], %s5312_s17, %s5312_s17, %s5300_s13  }
  0x9c   : > { %s3380_s18 = sadd.s32 4294967294, %s4321_s28   ;;  %s4590_s16 = sadd.s32 1, %s4321_s28  }
  0x9d   : > { %s36_s11 = ssub.s32 %s4321_s28, %s4590_s16  ;;  %s39_s7 = sadd.s32 1, %s4317_s27 }
  0x9e   : > { %p37_p8 = scmp.eq.s32.totalorder %s36_s11, 0  ;;  %p46_p1 = scmp.ne.s32.totalorder %s4317_s27, %s4313_s26 }
  0x9f   : > { %p47_p3 = scmp.eq.s32.totalorder %s4321_s28, 0  ;;  %p52_p11 = scmp.ne.s32.totalorder %s4313_s26, %s4309_s25 }
  0xa0   : > { %s4601_s1 = scalar_select %p37_p8, %s4317_s27, %s39_s7  }
  0xa1   : > { %p4603_p12 = por %p47_p3, %p46_p1  ;;  %p5314_p13 = scmp.eq.s32.totalorder %s4430_s14, 0 }
  0xa2   : > { %p328_p0 = scmp.eq.s32.totalorder %s4430_s14, 1  ;;  %p334_p2 = scmp.eq.s32.totalorder %s3380_s18, 1 }
  0xa3   : > { %p4609_p6 = por %p5314_p13, %p52_p11  ;;  %p3822_p5 = scmp.lt.s32.totalorder %s4321_s28, 2 }
  0xa4   : > { %s446_s19 = sand.u32 1, %s4317_s27   ;;  %p4616_p7 = por %p328_p0, %p46_p1 }
  0xa5   : > { %p4620_p9 = por %p334_p2, %p52_p11  ;;  %s3389_s9 = sshll.u32 %s446_s19, 5 }
  0xa6   : > { %s5316_s21 = scalar_select %p4616_p7, 1, 0 }
  0xa7   : > { %s5317_s30 = scalar_select %p4620_p9, 1, 0 }
  0xa8   : > { %s3499_s22 = sshll.u32 %s4321_s28, 9  ;;  %s450_s18 = scalar_lea.vmem [#allocation2], %s3389_s9 }
  0xa9   : > { %s4628_s12 = scalar_lea.hbm %s5279_s0, %s3499_s22  ;;  %s457_s11 = sshll.u32 %s450_s18, 4  ;;  %s4630_s11 = int_to_ptr.vmem [resolvable:$true] %s457_s11 }
  0xaa   : > { %p4634_p4 = pnand %p3822_p5, %p4603_p12  ;;  %s4638_s13 = scalar_lea.sflag [#allocation3], %s446_s19 }
  0xab   : > { %s4213_s24 = scalar_lea.hbm %s4628_s12, 512  ;;  %s4218_s29 = scalar_lea.hbm %s5279_s0, 1024 }
  0xac   : > { %p4214_p10 = scmp.ne.s32.totalorder %s4628_s12, %s4213_s24  ;;  %p4215_p8 = pneg %p4634_p4 }
  0xad   : > { %p4219_p11 = scmp.lt.u32.totalorder %s4628_s12, %s5279_s0  ;;  %p4220_p12 = scmp.lt.u32.totalorder %s4218_s29, %s4213_s24 }
  0xae   : > { %p4216_p1 = pnand %p4215_p8, %p4214_p10  ;;  %p4222_p0 = scmp.lt.u32.totalorder %s4213_s24, %s4628_s12 }
  0xaf   : > { %p4221_p13 = por %p4220_p12, %p4219_p11 }
  0xb0   : > { %p4217_p3 = pneg %p4216_p1 }
  0xb1   : > { %p4223_p2 = por %p4222_p0, %p4221_p13 }
  0xb3   : > { %p4224_p5 = pnand %p4223_p2, %p4217_p3 }
  0xb5   : > { %4227 = shalt.err (!%p4224_p5)
}
  0xb6   : > { %s4228_s19 = scalar_lea.vmem %s4630_s11, 512  ;;  %s4333_s9 = smov [#allocation2]  }
  0xb7   : > { %p4229_p10 = scmp.ne.s32.totalorder %s4630_s11, %s4228_s19  ;;  %s4233_s22 = sshll.u32 %s4333_s9, 4  ;;  %s4234_s22 = int_to_ptr.vmem [resolvable:$false] %s4233_s22 }
  0xb8   : > { %s4235_s20 = scalar_lea.vmem %s4234_s22, 1024  ;;  %p4236_p7 = scmp.lt.s32.totalorder %s4630_s11, %s4234_s22 }
  0xb9   : > { %p4231_p1 = pnand %p4229_p10, %p4215_p8  ;;  %p4237_p11 = scmp.lt.s32.totalorder %s4235_s20, %s4228_s19 }
  0xbb   : > { %p4232_p9 = pneg %p4231_p1  ;;  %p4238_p12 = por %p4237_p11, %p4236_p7 }
  0xbd   : > { %p4239_p13 = pnand %p4238_p12, %p4232_p9 }
  0xbf   : > { %4242 = shalt.err (!%p4239_p13)
}
  0xc0   : > { %s5319_s24 = smov 4   ;;  %p5320_p8 = scmp.ne.s32.totalorder %s5308_s15, 0 }
  0xc1   : > { %3811 = dma.hbm_to_vmem [thread:$0]  (!%p4634_p4), %s4628_s12, 512, %s4630_s11, %s4638_s13, %s5312_s17, %s5312_s17, %s5319_s24  }
  0xc2   : > { %469 = sbr.rel (%p5320_p8) target bundleno = 2639 (0xa4f), region = 72  ;;  %s4672_s29 = sand.u32 (!%p5320_p8), 1, %s4313_s26  }
  0xc3   : > { %s3393_s18 = sshll.u32 (!%p5320_p8), %s4672_s29, 5  ;;  %s472_s19 = scalar_lea.sflag (!%p5320_p8), [#allocation3], %s4672_s29 }
  0xc4   : > { %s4676_s9 = scalar_lea.vmem (!%p5320_p8), [#allocation2], %s3393_s18 }
  0xc9   : > { %4288 = dma.done.wait (%p4609_p6), %s472_s19, 512  }
  0xca   : > { %4290 = vsyncadd (%p4609_p6), %s472_s19, 4294966784  ;;  %p5321_p7 = scmp.eq.s32.totalorder %s4430_s14, 0 }
  0xcc   : > { %4292 = dma.done.wait (%p5321_p7), [#allocation6], 1040   ;;  %p5322_p9 = pmov %p5321_p7 }
  0xcd   : > { %p5323_p4 = pmov %p5321_p7 }
  0xce   : > { %4294 = vsyncadd (%p5322_p9), [#allocation6], 4294966256 }
  0xcf   : > { %4296 = dma.done.wait (%p5323_p4), [#allocation9], 2080   ;;  %p5324_p3 = pmov %p5323_p4 }
  0xd1   : > { %4298 = vsyncadd (%p5324_p3), [#allocation9], 4294965216  ;;  %p5325_p0 = pmov %p5324_p3 }
  0xd3   : > { %4300 = dma.done.wait (%p5325_p0), [#allocation12], 4096   ;;  %p5326_p2 = pmov %p5325_p0 }
  0xd4   : > { %v3876_v0 = vld [vmem:[#allocation5] sm:$0xff]   ;;  %v3877_v1 = vld [vmem:[#allocation5 + $0x8] sm:$0xff]   ;;  %v3878_v2 = vld [vmem:[#allocation5 + $0x10] sm:$0xff]   ;;  %vm4336_vm0 = vmmov 0   ;;  %vm1664_vm1 = vcmask 1043456   ;;  %vm1476_vm2 = vcmask 64512  }
  0xd5   : > { %4302 = vsyncadd (%p5326_p2), [#allocation12], 4294963200  ;;  %3601 = vmatprep.subr.bf16.mxu0 %v3876_v0  ;;  %v3879_v3 = vld [vmem:[#allocation5 + $0x18] sm:$0xff]   ;;  %v3884_v4 = vld [vmem:[%s4676_s9] sm:$0xff]   ;;  %s5327_s20 = sld [smem:[#allocation21_spill]]  ;;  %vm2096_vm3 = vcmask 1041408  }
  0xd6   : > { %3602 = vmatpush3.bf16.msra.mxu0 %v3876_v0  ;;  %3617 = vmatprep.mubr.bf16.mxu0 %v3884_v4  ;;  %v3880_v5 = vld [vmem:[#allocation5 + $0x20] sm:$0xff]   ;;  %v3881_v6 = vld [vmem:[#allocation5 + $0x28] sm:$0xff]   ;;  %v3882_v7 = vld [vmem:[#allocation5 + $0x30] sm:$0xff]   ;;  %s5328_s15 = sld [smem:[#allocation22_spill]]  ;;  %s5329_s23 = sld [smem:[#allocation23_spill]] }
  0xd7   : > { %3603 = vmatprep.subr.bf16.mxu0 %v3877_v1  ;;  %v3883_v8 = vld [vmem:[#allocation5 + $0x38] sm:$0xff]   ;;  %v3885_v9 = vld [vmem:[%s4676_s9 + $0x8] sm:$0xff]   ;;  %v3886_v10 = vld [vmem:[%s4676_s9 + $0x10] sm:$0xff]   ;;  %s5330_s7 = sld [smem:[#allocation24_spill]]  ;;  %s3400_s18 = sshll.u32 %s4672_s29, 3 }
  0xd8   : > { %v3887_v11 = vld [vmem:[%s4676_s9 + $0x18] sm:$0xff]   ;;  %v3401_v12 = vld [vmem:[#allocation7] ss:$0 sm:$0xff]  ;;  %v3888_v61 = vld [vmem:[#allocation8 + $0x4] ss:$8 sps:$4 sm:$0xff]   ;;  %s3496_s19 = sshll.u32 %s4430_s14, 7 }
  0xd9   : > { %v3890_v62 = vld [vmem:[#allocation8] ss:$8 sps:$4 sm:$0xff]   ;;  %1011 = vmatprep.subr.bf16.mxu1 %v3888_v61  ;;  %v3891_v63 = vld [vmem:[#allocation8 + $0x14] ss:$8 sps:$4 sm:$0xff]   ;;  %v3893_v0 = vld [vmem:[#allocation8 + $0x10] ss:$8 sps:$4 sm:$0xff]  }
  0xda   : > { %3604 = vmatpush3.bf16.msra.mxu0 %v3877_v1  ;;  %1012 = vmatpush1.bf16.msra.mxu1 %v3890_v62  ;;  %v3894_v1 = vld [vmem:[#allocation8 + $0x24] ss:$8 sps:$4 sm:$0xff]   ;;  %v3899_v4 = vld [vmem:[#allocation8 + $0x30] ss:$8 sps:$4 sm:$0xff]   ;;  %s541_s9 = scalar_lea.vmem [#allocation14], %s3400_s18  ;;  %s3240_s11 = scalar_lea.sflag [#allocation4], %s4672_s29 }
  0xdb   : > { %3605 = vmatprep.subr.bf16.mxu0 %v3878_v2  ;;  %1013 = vmatprep.subr.bf16.mxu1 %v3891_v63  ;;  %p5332_p5 = scmp.ne.s32.totalorder %s5316_s21, 0  ;;  %s4338_s14 = smov [#allocation14]  }
  0xdc   : > { %s4247_s24 = sshll.u32 %s4338_s14, 4  ;;  %s4248_s24 = int_to_ptr.vmem [resolvable:$false] %s4247_s24 }
  0xdd   : > { %s4249_s18 = scalar_lea.vmem %s4248_s24, 256 }
  0xde   : > { %3606 = vmatpush3.bf16.msra.mxu0 %v3878_v2  ;;  %1014 = vmatpush1.bf16.msra.mxu1 %v3893_v0  ;;  %v3896_v2 = vld [vmem:[#allocation8 + $0x20] ss:$8 sps:$4 sm:$0xff]  }
  0xdf   : > { %3607 = vmatprep.subr.bf16.mxu0 %v3879_v3  ;;  %1015 = vmatprep.subr.bf16.mxu1 %v3894_v1 }
  0xe2   : > { %3608 = vmatpush3.bf16.msra.mxu0 %v3879_v3  ;;  %1016 = vmatpush1.bf16.msra.mxu1 %v3896_v2  ;;  %v3897_v3 = vld [vmem:[#allocation8 + $0x34] ss:$8 sps:$4 sm:$0xff]  }
  0xe3   : > { %3609 = vmatprep.subr.bf16.mxu0 %v3880_v5  ;;  %1017 = vmatprep.subr.bf16.mxu1 %v3897_v3 }
  0xe6   : > { %3610 = vmatpush3.bf16.msra.mxu0 %v3880_v5  ;;  %1018 = vmatpush1.bf16.msra.mxu1 %v3899_v4  ;;  %v3900_v5 = vld [vmem:[#allocation8 + $0x44] ss:$8 sps:$4 sm:$0xff]  }
  0xe7   : > { %3611 = vmatprep.subr.bf16.mxu0 %v3881_v6  ;;  %1019 = vmatprep.subr.bf16.mxu1 %v3900_v5 }
  0xea   : > { %3612 = vmatpush3.bf16.msra.mxu0 %v3881_v6  ;;  %v3902_v6 = vld [vmem:[#allocation8 + $0x40] ss:$8 sps:$4 sm:$0xff]  }
  0xeb   : > { %3613 = vmatprep.subr.bf16.mxu0 %v3882_v7  ;;  %1020 = vmatpush1.bf16.msra.mxu1 %v3902_v6 }
  0xee   : > { %3614 = vmatpush3.bf16.msra.mxu0 %v3882_v7  ;;  %v3903_v7 = vld [vmem:[#allocation8 + $0x54] ss:$8 sps:$4 sm:$0xff]  }
  0xef   : > { %3615 = vmatprep.subr.bf16.mxu0 %v3883_v8  ;;  %1021 = vmatprep.subr.bf16.mxu1 %v3903_v7 }
  0xf2   : > { %3616 = vmatpush3.bf16.msra.mxu0 %v3883_v8  ;;  %v3905_v8 = vld [vmem:[#allocation8 + $0x50] ss:$8 sps:$4 sm:$0xff]  }
  0xf3   : > { %1022 = vmatpush1.bf16.msra.mxu1 %v3905_v8 }
  0xf5   : > { %3618 = vmatmul.mubr.bf16.vlgmr.msra.gmra.mrb[0].mxu0 %v3885_v9  ;;  %v4334_v9 = vmov 0  }
  0xf6   : > { %3621 = vmatprep.mubr.bf16.mxu0 %v3886_v10  ;;  %1043 = vmatprep.mubr.bf16.mxu1 %v4334_v9  ;;  %v3906_v10 = vld [vmem:[#allocation8 + $0x64] ss:$8 sps:$4 sm:$0xff]  }
  0xf7   : > { %1023 = vmatprep.subr.bf16.mxu1 %v3906_v10 }
  0xfd   : > { %3622 = vmatmul.mubr.bf16.gmra.mrb[4].mxu0 %v3887_v11  ;;  %v3908_v11 = vld [vmem:[#allocation8 + $0x60] ss:$8 sps:$4 sm:$0xff]  }
  0xfe   : > { %1024 = vmatpush1.bf16.msra.mxu1 %v3908_v11 }
 0x1c8   : > { %v3619_v13 = vpop.f32.mrb[0].mxu0 }
 0x1c9   : > { %v690_v14 = vadd.f32 %v3619_v13, %v3401_v12  ;;  %v681_v15 = vpop.f32.mrb[1].mxu0  ;;  %v3911_v13 = vld [vmem:[#allocation8 + $0x70] ss:$8 sps:$4 sm:$0xff]  }
 0x1ca   : > { %v682_v16 = vadd.f32 %v3401_v12, %v681_v15  ;;  %v3620_v17 = vpop.f32.mrb[2].mxu0 }
 0x1cb   : > { %718 = vadd.xlane.f32.xlu1 %v690_v14  ;;  %v684_v18 = vpop.f32.mrb[3].mxu0  ;;  %v693_v19 = vadd.f32 %v3620_v17, %v3401_v12 }
 0x1cc   : > { %714 = vadd.xlane.f32.xlu0 %v682_v16  ;;  %v685_v20 = vadd.f32 %v3401_v12, %v684_v18 }
 0x1cf   : > { %720 = vadd.xlane.f32.xlu1 %v693_v19 }
 0x1d0   : > { %v3623_v21 = vpop.f32.mrb[4].mxu0  ;;  %716 = vadd.xlane.f32.xlu0 %v685_v20 }
 0x1d1   : > { %v697_v22 = vpop.f32.mrb[5].mxu0  ;;  %v706_v26 = vadd.f32 %v3623_v21, %v3401_v12 }
 0x1d2   : > { %v698_v23 = vadd.f32 %v3401_v12, %v697_v22  ;;  %v3624_v24 = vpop.f32.mrb[6].mxu0 }
 0x1d3   : > { %v700_v25 = vpop.f32.mrb[7].mxu0  ;;  %v709_v28 = vadd.f32 %v3624_v24, %v3401_v12 }
 0x1d4   : > { %v701_v27 = vadd.f32 %v3401_v12, %v700_v25  ;;  %722 = vadd.xlane.f32.xlu0 %v698_v23  ;;  %v3909_v12 = vld [vmem:[#allocation8 + $0x74] ss:$8 sps:$4 sm:$0xff]  }
 0x1d5   : > { %1025 = vmatprep.subr.bf16.mxu1 %v3909_v12 }
 0x1d6   : > { %724 = vadd.xlane.f32.xlu1 %v701_v27  ;;  %1026 = vmatpush1.bf16.msra.mxu1 %v3911_v13 }
 0x1d8   : > { %726 = vadd.xlane.f32.xlu0 %v706_v26 }
 0x1da   : > { %728 = vadd.xlane.f32.xlu1 %v709_v28 }
 0x258   : > { %v719_v29 = vpop.xlane.xlu1 %718 }
 0x259   : > { %v715_v30 = vpop.xlane.xlu0 %714  ;;  %v733_v31 = vmul.f32 0.0078125, %v719_v29 }
 0x25a   : > { %v731_v32 = vmul.f32 0.0078125, %v715_v30 }
 0x25b   : > { %v4700_v36 = vsub.f32 %v690_v14, %v733_v31 }
 0x25c   : > { %v4698_v33 = vsub.f32 %v682_v16, %v731_v32  ;;  %v721_v34 = vpop.xlane.xlu1 %720 }
 0x25d   : > { %v717_v35 = vpop.xlane.xlu0 %716  ;;  %v734_v37 = vmul.f32 0.0078125, %v721_v34  ;;  %v749_v44 = vmul.f32 %v4700_v36, %v4700_v36 }
 0x25e   : > { %v732_v38 = vmul.f32 0.0078125, %v717_v35  ;;  %v747_v39 = vmul.f32 %v4698_v33, %v4698_v33  ;;  %v3414_v35 = vld [vmem:[%s5282_s3] ss:$0 sm:$0xff] }
 0x25f   : > { %v4706_v42 = vsub.f32 %v693_v19, %v734_v37 }
 0x260   : > { %v4704_v40 = vsub.f32 %v685_v20, %v732_v38  ;;  %755 = vadd.xlane.f32.xlu0 %v747_v39 }
 0x261   : > { %v723_v41 = vpop.xlane.xlu0 %722  ;;  %v750_v52 = vmul.f32 %v4706_v42, %v4706_v42 }
 0x262   : > { %v735_v43 = vmul.f32 0.0078125, %v723_v41  ;;  %v748_v45 = vmul.f32 %v4704_v40, %v4704_v40 }
 0x263   : > { %v725_v46 = vpop.xlane.xlu1 %724 }
 0x264   : > { %v4712_v47 = vsub.f32 %v698_v23, %v735_v43  ;;  %v736_v48 = vmul.f32 0.0078125, %v725_v46  ;;  %759 = vadd.xlane.f32.xlu0 %v749_v44  ;;  %757 = vadd.xlane.f32.xlu1 %v748_v45  ;;  %v3415_v43 = vld [vmem:[%s5282_s3 + $0x1] ss:$0 sm:$0xff] }
 0x265   : > { %v727_v49 = vpop.xlane.xlu0 %726 }
 0x266   : > { %v4714_v50 = vsub.f32 %v701_v27, %v736_v48  ;;  %v737_v51 = vmul.f32 0.0078125, %v727_v49  ;;  %v751_v53 = vmul.f32 %v4712_v47, %v4712_v47 }
 0x267   : > { %v729_v54 = vpop.xlane.xlu1 %728 }
 0x268   : > { %v4720_v55 = vsub.f32 %v706_v26, %v737_v51  ;;  %v738_v56 = vmul.f32 0.0078125, %v729_v54  ;;  %761 = vadd.xlane.f32.xlu1 %v750_v52  ;;  %763 = vadd.xlane.f32.xlu0 %v751_v53  ;;  %v752_v58 = vmul.f32 %v4714_v50, %v4714_v50 }
 0x26a   : > { %v4722_v57 = vsub.f32 %v709_v28, %v738_v56  ;;  %v753_v59 = vmul.f32 %v4720_v55, %v4720_v55 }
 0x26c   : > { %765 = vadd.xlane.f32.xlu1 %v752_v58  ;;  %767 = vadd.xlane.f32.xlu0 %v753_v59  ;;  %v754_v60 = vmul.f32 %v4722_v57, %v4722_v57 }
 0x270   : > { %769 = vadd.xlane.f32.xlu1 %v754_v60 }
 0x2ed   : > { %v756_v14 = vpop.xlane.xlu0 %755 }
 0x2ee   : > { %v771_v15 = vmul.f32 0.0078125, %v756_v14 }
 0x2f0   : > { %v779_v16 = vadd.f32 1e-05, %v771_v15 }
 0x2f1   : > { %v758_v17 = vpop.xlane.xlu1 %757  ;;  %v760_v18 = vpop.xlane.xlu0 %759 }
 0x2f2   : > { %3945 = vrsqrt.f32 %v779_v16  ;;  %v772_v19 = vmul.f32 0.0078125, %v758_v17  ;;  %v773_v20 = vmul.f32 0.0078125, %v760_v18 }
 0x2f4   : > { %v780_v21 = vadd.f32 1e-05, %v772_v19  ;;  %v781_v22 = vadd.f32 1e-05, %v773_v20 }
 0x2f5   : > { %v762_v23 = vpop.xlane.xlu1 %761  ;;  %v764_v24 = vpop.xlane.xlu0 %763 }
 0x2f6   : > { %3947 = vrsqrt.f32 %v780_v21  ;;  %v774_v25 = vmul.f32 0.0078125, %v762_v23  ;;  %v775_v26 = vmul.f32 0.0078125, %v764_v24 }
 0x2f7   : > { %3949 = vrsqrt.f32 %v781_v22 }
 0x2f8   : > { %v782_v27 = vadd.f32 1e-05, %v774_v25  ;;  %v783_v28 = vadd.f32 1e-05, %v775_v26 }
 0x2f9   : > { %v766_v29 = vpop.xlane.xlu1 %765  ;;  %v768_v30 = vpop.xlane.xlu0 %767 }
 0x2fa   : > { %3951 = vrsqrt.f32 %v782_v27  ;;  %v776_v31 = vmul.f32 0.0078125, %v766_v29  ;;  %v777_v32 = vmul.f32 0.0078125, %v768_v30 }
 0x2fb   : > { %3953 = vrsqrt.f32 %v783_v28 }
 0x2fc   : > { %v3946_v34 = vpop.eup %3945  ;;  %v784_v37 = vadd.f32 1e-05, %v776_v31  ;;  %v785_v38 = vadd.f32 1e-05, %v777_v32 }
 0x2fd   : > { %v795_v39 = vmul.f32 %v3946_v34, %v4698_v33  ;;  %v770_v41 = vpop.xlane.xlu1 %769 }
 0x2fe   : > { %3955 = vrsqrt.f32 %v784_v37  ;;  %v778_v44 = vmul.f32 0.0078125, %v770_v41 }
 0x2ff   : > { %v807_v45 = vmul.f32 %v3414_v35, %v795_v39  ;;  %3957 = vrsqrt.f32 %v785_v38 }
 0x300   : > { %v3948_v46 = vpop.eup %3947  ;;  %v786_v48 = vadd.f32 1e-05, %v778_v44 }
 0x301   : > { %v3950_v49 = vpop.eup %3949  ;;  %v4738_v51 = vadd.f32 %v3415_v43, %v807_v45  ;;  %v796_v52 = vmul.f32 %v3948_v46, %v4704_v40 }
 0x302   : > { %v797_v53 = vmul.f32 %v3950_v49, %v4700_v36  ;;  %3959 = vrsqrt.f32 %v786_v48 }
 0x303   : > { %v808_v33 = vmul.f32 %v3414_v35, %v796_v52  ;;  %v835_v54 = vmul.f32 0.044715, %v4738_v51 }
 0x304   : > { %v3952_v56 = vpop.eup %3951  ;;  %v809_v58 = vmul.f32 %v3414_v35, %v797_v53 }
 0x305   : > { %v3954_v59 = vpop.eup %3953  ;;  %v4743_v60 = vadd.f32 %v3415_v43, %v808_v33  ;;  %v798_v61 = vmul.f32 %v3952_v56, %v4706_v42  ;;  %v843_v62 = vmul.f32 %v835_v54, %v4738_v51  ;;  %v827_v56 = vmul.f32 0.5, %v4738_v51 }
 0x306   : > { %v4747_v63 = vadd.f32 %v3415_v43, %v809_v58  ;;  %v799_v0 = vmul.f32 %v3954_v59, %v4712_v47 }
 0x307   : > { %v810_v40 = vmul.f32 %v3414_v35, %v798_v61  ;;  %v836_v36 = vmul.f32 0.044715, %v4743_v60  ;;  %v851_v1 = vmul.f32 %v843_v62, %v4738_v51  ;;  %v828_v58 = vmul.f32 0.5, %v4743_v60 }
 0x308   : > { %v3956_v2 = vpop.eup %3955  ;;  %v811_v3 = vmul.f32 %v3414_v35, %v799_v0  ;;  %v837_v4 = vmul.f32 0.044715, %v4747_v63 }
 0x309   : > { %v3958_v5 = vpop.eup %3957  ;;  %v4753_v6 = vadd.f32 %v3415_v43, %v810_v40  ;;  %v800_v42 = vmul.f32 %v3956_v2, %v4714_v50  ;;  %v844_v7 = vmul.f32 %v836_v36, %v4743_v60  ;;  %v859_v8 = vadd.f32 %v851_v1, %v4738_v51 }
 0x30a   : > { %v4758_v10 = vadd.f32 %v3415_v43, %v811_v3  ;;  %v801_v47 = vmul.f32 %v3958_v5, %v4720_v55  ;;  %v845_v11 = vmul.f32 %v837_v4, %v4747_v63  ;;  %v829_v51 = vmul.f32 0.5, %v4747_v63 }
 0x30b   : > { %v812_v12 = vmul.f32 %v3414_v35, %v800_v42  ;;  %v852_v13 = vmul.f32 %v844_v7, %v4743_v60  ;;  %v867_v14 = vmul.f32 0.7978846, %v859_v8  ;;  %v838_v17 = vmul.f32 0.044715, %v4753_v6 }
 0x30c   : > { %v3960_v15 = vpop.eup %3959  ;;  %v813_v16 = vmul.f32 %v3414_v35, %v801_v47  ;;  %v853_v50 = vmul.f32 %v845_v11, %v4747_v63  ;;  %v839_v23 = vmul.f32 0.044715, %v4758_v10  ;;  %v830_v5 = vmul.f32 0.5, %v4753_v6 }
 0x30d   : > { %v4765_v18 = vadd.f32 %v3415_v43, %v812_v12  ;;  %v802_v19 = vmul.f32 %v3960_v15, %v4722_v57  ;;  %v860_v20 = vadd.f32 %v852_v13, %v4743_v60  ;;  %3961 = vtanh.f32 %v867_v14 }
 0x30e   : > { %v4769_v55 = vadd.f32 %v3415_v43, %v813_v16  ;;  %v846_v21 = vmul.f32 %v838_v17, %v4753_v6  ;;  %v861_v22 = vadd.f32 %v853_v50, %v4747_v63  ;;  %v847_v57 = vmul.f32 %v839_v23, %v4758_v10 }
 0x30f   : > { %v814_v24 = vmul.f32 %v3414_v35, %v802_v19  ;;  %v868_v25 = vmul.f32 0.7978846, %v860_v20  ;;  %v840_v26 = vmul.f32 0.044715, %v4765_v18  ;;  %v832_v13 = vmul.f32 0.5, %v4765_v18 }
 0x310   : > { %v854_v27 = vmul.f32 %v846_v21, %v4753_v6  ;;  %v869_v28 = vmul.f32 0.7978846, %v861_v22  ;;  %v841_v31 = vmul.f32 0.044715, %v4769_v55  ;;  %v855_v34 = vmul.f32 %v847_v57, %v4758_v10 }
 0x311   : > { %v826_v29 = vadd.f32 %v3415_v43, %v814_v24  ;;  %3963 = vtanh.f32 %v868_v25  ;;  %v848_v30 = vmul.f32 %v840_v26, %v4765_v18  ;;  %v833_v22 = vmul.f32 0.5, %v4769_v55  ;;  %v919_v26 = vld [vmem:[#allocation10] sm:$0x3] }
 0x312   : > { %v862_v32 = vadd.f32 %v854_v27, %v4753_v6  ;;  %3965 = vtanh.f32 %v869_v28  ;;  %v863_v39 = vadd.f32 %v855_v34, %v4758_v10  ;;  %v849_v43 = vmul.f32 %v841_v31, %v4769_v55 }
 0x313   : > { %v856_v35 = vmul.f32 %v848_v30, %v4765_v18  ;;  %v842_v37 = vmul.f32 0.044715, %v826_v29  ;;  %v831_v6 = vmul.f32 0.5, %v4758_v10  ;;  %v834_v20 = vmul.f32 0.5, %v826_v29 }
 0x314   : > { %v870_v38 = vmul.f32 0.7978846, %v862_v32  ;;  %v871_v49 = vmul.f32 0.7978846, %v863_v39  ;;  %v857_v52 = vmul.f32 %v849_v43, %v4769_v55  ;;  %v4335_v25 = vmov 0.0   ;;  %v4819_v39 = vld [vmem:[%s5285_s6] sm:$0xff]  }
 0x315   : > { %v864_v41 = vadd.f32 %v856_v35, %v4765_v18  ;;  %v850_v44 = vmul.f32 %v842_v37, %v826_v29  ;;  %3625 = vmatprep.subr.bf16.mxu1 %v4335_v25  ;;  %3637 = vmatprep.subr.bf16.mxu0 %v4335_v25  ;;  %v921_v10 = vlaneseq }
 0x316   : > { %3967 = vtanh.f32 %v870_v38  ;;  %v865_v61 = vadd.f32 %v857_v52, %v4769_v55  ;;  %3639 = vmatprep.mubr.msk.bf16.mxu0 %vm4336_vm0, %v4335_v25 }
 0x317   : > { %v3962_v45 = vpop.eup %3961  ;;  %v872_v46 = vmul.f32 0.7978846, %v864_v41  ;;  %v858_v48 = vmul.f32 %v850_v44, %v826_v29 }
 0x318   : > { %v883_v53 = vadd.f32 1.0, %v3962_v45  ;;  %v873_v4 = vmul.f32 0.7978846, %v865_v61 }
 0x319   : > { %3969 = vtanh.f32 %v872_v46  ;;  %v866_v54 = vadd.f32 %v858_v48, %v826_v29 }
 0x31a   : > { %3971 = vtanh.f32 %v871_v49  ;;  %v891_v0 = vmul.f32 %v883_v53, %v827_v56 }
 0x31b   : > { %v3964_v33 = vpop.eup %3963  ;;  %v874_v36 = vmul.f32 0.7978846, %v866_v54 }
 0x31c   : > { %v884_v59 = vadd.f32 1.0, %v3964_v33  ;;  %v3966_v62 = vpop.eup %3965 }
 0x31d   : > { %v885_v42 = vadd.f32 1.0, %v3966_v62  ;;  %3973 = vtanh.f32 %v874_v36 }
 0x31e   : > { %v892_v40 = vmul.f32 %v884_v59, %v828_v58  ;;  %3975 = vtanh.f32 %v873_v4 }
 0x31f   : > { %v893_v8 = vmul.f32 %v885_v42, %v829_v51 }
 0x320   : > { %v3968_v1 = vpop.eup %3967  ;;  %v899_v2 = vpack.c.bf16 %v892_v40, %v891_v0 }
 0x321   : > { %v886_v3 = vadd.f32 1.0, %v3968_v1 }
 0x322   : > { %1044 = vmatmul.mubr.bf16.vlgmr.msra.gmra.mrb[0].mxu1 %v899_v2 }
 0x323   : > { %1053 = vmatprep.mubr.bf16.mxu1 %v4334_v9  ;;  %v894_v60 = vmul.f32 %v886_v3, %v830_v5  ;;  %v3970_v7 = vpop.eup %3969 }
 0x324   : > { %v3972_v47 = vpop.eup %3971  ;;  %v888_v12 = vadd.f32 1.0, %v3970_v7 }
 0x325   : > { %v900_v11 = vpack.c.bf16 %v894_v60, %v893_v8  ;;  %v887_v14 = vadd.f32 1.0, %v3972_v47 }
 0x326   : > { %v896_v15 = vmul.f32 %v888_v12, %v832_v13 }
 0x327   : > { %v3974_v16 = vpop.eup %3973  ;;  %v895_v17 = vmul.f32 %v887_v14, %v831_v6 }
 0x328   : > { %v3976_v50 = vpop.eup %3975  ;;  %v890_v19 = vadd.f32 1.0, %v3974_v16 }
 0x329   : > { %v901_v63 = vpack.c.bf16 %v896_v15, %v895_v17  ;;  %v889_v21 = vadd.f32 1.0, %v3976_v50 }
 0x32a   : > { %1054 = vmatmul.mubr.bf16.gmra.mrb[4].mxu1 %v900_v11  ;;  %v898_v23 = vmul.f32 %v890_v19, %v834_v20 }
 0x32b   : > { %1063 = vmatprep.mubr.bf16.mxu1 %v4334_v9  ;;  %v897_v18 = vmul.f32 %v889_v21, %v833_v22 }
 0x32d   : > { %v902_v24 = vpack.c.bf16 %v898_v23, %v897_v18 }
 0x332   : > { %1064 = vmatmul.mubr.bf16.gmra.mrb[8].mxu1 %v901_v63 }
 0x333   : > { %1073 = vmatprep.mubr.bf16.mxu1 %v4334_v9  ;;  %v4803_v9 = vshrl.u32 %v921_v10, 7 }
 0x335   : > { %v923_v55 = vsub.s32 0, %v4803_v9  ;;  %v927_v34 = vsub.s32 1, %v4803_v9 }
 0x337   : > { %v4806_v27 = vrot.slane %v919_v26, %v923_v55  ;;  %v4814_v37 = vrot.slane %v919_v26, %v927_v34 }
 0x33a   : > { %1074 = vmatmul.mubr.bf16.gmra.mrb[12].mxu1 %v902_v24 }
 0x33b   : > { %3627 = vmatprep.mubr.msk.bf16.mxu1 %vm4336_vm0, %v4335_v25 }
 0x3f5   : > { %v1045_v28 = vpop.f32.mrb[0].mxu1 }
 0x3f6   : > { %v1046_v57 = vadd.f32 %v1045_v28, %v4806_v27  ;;  %v1047_v29 = vpop.f32.mrb[1].mxu1 }
 0x3f7   : > { %v1049_v30 = vpop.f32.mrb[2].mxu1  ;;  %v1048_v15 = vadd.f32 %v1047_v29, %v4814_v37 }
 0x3f8   : > { %v3500_v31 = vpack.c.bf16 %v1046_v57, %v1046_v57  ;;  %v4809_v32 = vpop.f32.mrb[3].mxu1  ;;  %v1050_v35 = vadd.f32 %v1049_v30, %v4806_v27 }
 0x3f9   : > { %v3508_v20 = vpack.c.bf16 %v1048_v15, %v1048_v15  ;;  %v1052_v18 = vadd.f32 %v4809_v32, %v4814_v37 }
 0x3fa   : > { %3626 = vmatpush3.bf16.xpose.msra.mxu1 %v3500_v31  ;;  %v3501_v46 = vpack.c.bf16 %v1050_v35, %v1050_v35 }
 0x3fb   : > { %3631 = vmatprep.subr.bf16.mxu1 %v4335_v25  ;;  %v1666_v23 = vsel %vm1664_vm1, %v3508_v20, 0  ;;  %v3509_v24 = vpack.c.bf16 %v1052_v18, %v1052_v18 }
 0x3fd   : > { %v1055_v38 = vpop.f32.mrb[4].mxu1  ;;  %v1713_v10 = vsel %vm1664_vm1, %v3509_v24, 0 }
 0x3fe   : > { %v1056_v41 = vadd.f32 %v1055_v38, %v4806_v27  ;;  %v1057_v43 = vpop.f32.mrb[5].mxu1 }
 0x3ff   : > { %v1058_v44 = vadd.f32 %v1057_v43, %v4814_v37  ;;  %v1059_v45 = vpop.f32.mrb[6].mxu1 }
 0x400   : > { %v3502_v48 = vpack.c.bf16 %v1056_v41, %v1056_v41  ;;  %v1061_v49 = vpop.f32.mrb[7].mxu1  ;;  %v1060_v56 = vadd.f32 %v1059_v45, %v4806_v27 }
 0x401   : > { %v3510_v52 = vpack.c.bf16 %v1058_v44, %v1058_v44  ;;  %v1062_v53 = vadd.f32 %v1061_v49, %v4814_v37  ;;  %3628 = vmatmul.mubr.bf16.vlgmr.msra.gmra.mrb[16].mxu1 %v4819_v39 }
 0x402   : > { %3632 = vmatpush3.bf16.xpose.msra.mxu1 %v3501_v46  ;;  %3638 = vmatpush3.bf16.xpose.msra.mxu0 %v3502_v48  ;;  %v3503_v36 = vpack.c.bf16 %v1060_v56, %v1060_v56 }
 0x403   : > { %v4826_v33 = vsel %vm1664_vm1, %v3510_v52, 0  ;;  %v3511_v54 = vpack.c.bf16 %v1062_v53, %v1062_v53  ;;  %3633 = vmatprep.mubr.msk.bf16.mxu1 %vm4336_vm0, %v4335_v25  ;;  %3643 = vmatprep.subr.bf16.mxu1 %v4335_v25 }
 0x404   : > { %3649 = vmatprep.subr.bf16.mxu0 %v4335_v25 }
 0x405   : > { %v4834_v58 = vsel %vm1664_vm1, %v3511_v54, 0  ;;  %v1065_v59 = vpop.f32.mrb[8].mxu1 }
 0x406   : > { %v1066_v61 = vadd.f32 %v1065_v59, %v4806_v27  ;;  %v1067_v62 = vpop.f32.mrb[9].mxu1 }
 0x407   : > { %v1068_v0 = vadd.f32 %v1067_v62, %v4814_v37  ;;  %v1069_v40 = vpop.f32.mrb[10].mxu1 }
 0x408   : > { %v3504_v1 = vpack.c.bf16 %v1066_v61, %v1066_v61  ;;  %v1071_v2 = vpop.f32.mrb[11].mxu1  ;;  %v1070_v51 = vadd.f32 %v1069_v40, %v4806_v27 }
 0x409   : > { %v3512_v3 = vpack.c.bf16 %v1068_v0, %v1068_v0  ;;  %v1072_v4 = vadd.f32 %v1071_v2, %v4814_v37  ;;  %3634 = vmatmul.mubr.bf16.vlgmr.msra.gmra.mrb[20].mxu1 %v4819_v39  ;;  %3640 = vmatmul.mubr.bf16.vlgmr.msra.gmra.mrb[8].mxu0 %v4819_v39 }
 0x40a   : > { %3644 = vmatpush3.bf16.xpose.msra.mxu1 %v3503_v36  ;;  %3650 = vmatpush3.bf16.xpose.msra.mxu0 %v3504_v1  ;;  %v3505_v13 = vpack.c.bf16 %v1070_v51, %v1070_v51 }
 0x40b   : > { %v4842_v5 = vsel %vm1664_vm1, %v3512_v3, 0  ;;  %v3513_v42 = vpack.c.bf16 %v1072_v4, %v1072_v4  ;;  %3645 = vmatprep.mubr.msk.bf16.mxu1 %vm4336_vm0, %v4335_v25  ;;  %3651 = vmatprep.mubr.msk.bf16.mxu0 %vm4336_vm0, %v4335_v25 }
 0x40c   : > { %3655 = vmatprep.subr.bf16.mxu1 %v4335_v25  ;;  %3661 = vmatprep.subr.bf16.mxu0 %v4335_v25 }
 0x40d   : > { %v4852_v60 = vsel %vm1664_vm1, %v3513_v42, 0  ;;  %v1075_v7 = vpop.f32.mrb[12].mxu1 }
 0x40e   : > { %v1076_v8 = vadd.f32 %v1075_v7, %v4806_v27  ;;  %v1077_v47 = vpop.f32.mrb[13].mxu1 }
 0x40f   : > { %v1078_v11 = vadd.f32 %v1077_v47, %v4814_v37  ;;  %v1079_v12 = vpop.f32.mrb[14].mxu1 }
 0x410   : > { %v3506_v14 = vpack.c.bf16 %v1076_v8, %v1076_v8  ;;  %v1081_v6 = vpop.f32.mrb[15].mxu1  ;;  %v1080_v19 = vadd.f32 %v1079_v12, %v4806_v27 }
 0x411   : > { %v3514_v16 = vpack.c.bf16 %v1078_v11, %v1078_v11  ;;  %v1082_v17 = vadd.f32 %v1081_v6, %v4814_v37  ;;  %3646 = vmatmul.mubr.bf16.vlgmr.msra.gmra.mrb[24].mxu1 %v4819_v39  ;;  %3652 = vmatmul.mubr.bf16.vlgmr.msra.gmra.mrb[12].mxu0 %v4819_v39 }
 0x412   : > { %3656 = vmatpush3.bf16.xpose.msra.mxu1 %v3505_v13  ;;  %3662 = vmatpush3.bf16.xpose.msra.mxu0 %v3506_v14  ;;  %v3507_v22 = vpack.c.bf16 %v1080_v19, %v1080_v19 }
 0x413   : > { %v4861_v50 = vsel %vm1664_vm1, %v3514_v16, 0  ;;  %v3515_v63 = vpack.c.bf16 %v1082_v17, %v1082_v17  ;;  %3657 = vmatprep.mubr.msk.bf16.mxu1 %vm4336_vm0, %v4335_v25  ;;  %3663 = vmatprep.mubr.msk.bf16.mxu0 %vm4336_vm0, %v4335_v25 }
 0x414   : > { %3667 = vmatprep.subr.bf16.mxu1 %v4335_v25  ;;  %3673 = vmatprep.subr.bf16.mxu0 %v4335_v25 }
 0x415   : > { %v4871_v21 = vsel %vm1664_vm1, %v3515_v63, 0 }
 0x419   : > { %3658 = vmatmul.mubr.bf16.vlgmr.msra.gmra.mrb[28].mxu1 %v4819_v39  ;;  %3664 = vmatmul.mubr.bf16.vlgmr.msra.gmra.mrb[16].mxu0 %v4819_v39 }
 0x41a   : > { %3668 = vmatpush3.bf16.xpose.msra.mxu1 %v3507_v22  ;;  %3674 = vmatpush3.bf16.msra.mxu0 %v1666_v23 }
 0x41b   : > { %3669 = vmatprep.mubr.msk.bf16.mxu1 %vm4336_vm0, %v4335_v25  ;;  %3679 = vmatprep.subr.bf16.mxu1 %v4335_v25 }
 0x41c   : > { %3675 = vmatprep.mubr.msk.bf16.mxu0 %vm4336_vm0, %v4335_v25  ;;  %3685 = vmatprep.subr.bf16.mxu0 %v4335_v25 }
 0x421   : > { %3670 = vmatmul.mubr.bf16.vlgmr.msra.gmra.mrb[32].mxu1 %v4819_v39 }
 0x422   : > { %3680 = vmatpush3.bf16.msra.mxu1 %v1713_v10  ;;  %3681 = vmatprep.mubr.msk.bf16.mxu1 %vm4336_vm0, %v4335_v25 }
 0x423   : > { %3691 = vmatprep.subr.bf16.mxu1 %v4335_v25 }
 0x4d4   : > { %v4889_v55 = vpop.f32.mrb[16].mxu1 }
 0x4d5   : > { %v3629_v26 = vpop.f32.mrb[17].mxu1  ;;  %v1477_v27 = vsel %vm1476_vm2, %v4889_v55, -inf }
 0x4d6   : > { %1478 = vmax.xlane.f32.xlu0 %v1477_v27  ;;  %v4893_v28 = vpop.f32.mrb[18].mxu1 }
 0x4d7   : > { %v1480_v57 = vsel %vm1476_vm2, %v4893_v28, -inf  ;;  %v3630_v29 = vpop.f32.mrb[19].mxu1 }
 0x4d8   : > { %1481 = vmax.xlane.f32.xlu1 %v1480_v57 }
 0x4dc   : > { %v4897_v30 = vpop.f32.mrb[20].mxu1  ;;  %v4899_v31 = vpop.f32.mrb[8].mxu0 }
 0x4dd   : > { %v3635_v32 = vpop.f32.mrb[21].mxu1  ;;  %v1483_v34 = vsel %vm1476_vm2, %v4897_v30, -inf  ;;  %v3641_v35 = vpop.f32.mrb[9].mxu0  ;;  %v1489_v41 = vsel %vm1476_vm2, %v4899_v31, -inf }
 0x4de   : > { %1484 = vmax.xlane.f32.xlu0 %v1483_v34  ;;  %v4903_v37 = vpop.f32.mrb[22].mxu1  ;;  %v4905_v38 = vpop.f32.mrb[10].mxu0 }
 0x4df   : > { %v1486_v39 = vsel %vm1476_vm2, %v4903_v37, -inf  ;;  %v3636_v43 = vpop.f32.mrb[23].mxu1  ;;  %v3642_v44 = vpop.f32.mrb[11].mxu0  ;;  %v1492_v45 = vsel %vm1476_vm2, %v4905_v38, -inf }
 0x4e0   : > { %1487 = vmax.xlane.f32.xlu1 %v1486_v39 }
 0x4e2   : > { %1490 = vmax.xlane.f32.xlu0 %v1489_v41 }
 0x4e4   : > { %1493 = vmax.xlane.f32.xlu1 %v1492_v45  ;;  %v4913_v46 = vpop.f32.mrb[24].mxu1  ;;  %v4915_v48 = vpop.f32.mrb[12].mxu0 }
 0x4e5   : > { %v3647_v49 = vpop.f32.mrb[25].mxu1  ;;  %v1495_v52 = vsel %vm1476_vm2, %v4913_v46, -inf  ;;  %v3653_v53 = vpop.f32.mrb[13].mxu0  ;;  %v1501_v61 = vsel %vm1476_vm2, %v4915_v48, -inf }
 0x4e6   : > { %1496 = vmax.xlane.f32.xlu0 %v1495_v52  ;;  %v4919_v54 = vpop.f32.mrb[26].mxu1  ;;  %v4921_v56 = vpop.f32.mrb[14].mxu0 }
 0x4e7   : > { %v1498_v59 = vsel %vm1476_vm2, %v4919_v54, -inf  ;;  %v3648_v62 = vpop.f32.mrb[27].mxu1  ;;  %v3654_v0 = vpop.f32.mrb[15].mxu0  ;;  %v1504_v40 = vsel %vm1476_vm2, %v4921_v56, -inf }
 0x4e8   : > { %1499 = vmax.xlane.f32.xlu1 %v1498_v59 }
 0x4ea   : > { %1502 = vmax.xlane.f32.xlu0 %v1501_v61 }
 0x4ec   : > { %1505 = vmax.xlane.f32.xlu1 %v1504_v40  ;;  %v4929_v36 = vpop.f32.mrb[28].mxu1  ;;  %v4931_v1 = vpop.f32.mrb[16].mxu0 }
 0x4ed   : > { %v3659_v2 = vpop.f32.mrb[29].mxu1  ;;  %v1507_v3 = vsel %vm1476_vm2, %v4929_v36, -inf  ;;  %v3665_v4 = vpop.f32.mrb[17].mxu0  ;;  %v1513_v8 = vsel %vm1476_vm2, %v4931_v1, -inf }
 0x4ee   : > { %1508 = vmax.xlane.f32.xlu0 %v1507_v3  ;;  %v4935_v42 = vpop.f32.mrb[30].mxu1  ;;  %v4937_v51 = vpop.f32.mrb[18].mxu0 }
 0x4ef   : > { %v1510_v7 = vsel %vm1476_vm2, %v4935_v42, -inf  ;;  %v3660_v47 = vpop.f32.mrb[31].mxu1  ;;  %v3666_v11 = vpop.f32.mrb[19].mxu0  ;;  %v1516_v12 = vsel %vm1476_vm2, %v4937_v51, -inf }
 0x4f0   : > { %1511 = vmax.xlane.f32.xlu1 %v1510_v7 }
 0x4f2   : > { %1514 = vmax.xlane.f32.xlu0 %v1513_v8 }
 0x4f4   : > { %v4945_v13 = vpop.f32.mrb[32].mxu1  ;;  %1517 = vmax.xlane.f32.xlu1 %v1516_v12 }
 0x4f5   : > { %v3671_v14 = vpop.f32.mrb[33].mxu1  ;;  %v1519_v6 = vsel %vm1476_vm2, %v4945_v13, -inf }
 0x4f6   : > { %v4949_v15 = vpop.f32.mrb[34].mxu1  ;;  %1520 = vmax.xlane.f32.xlu0 %v1519_v6 }
 0x4f7   : > { %v1522_v16 = vsel %vm1476_vm2, %v4949_v15, -inf  ;;  %v3672_v17 = vpop.f32.mrb[35].mxu1 }
 0x4f8   : > { %1523 = vmax.xlane.f32.xlu1 %v1522_v16 }
 0x563   : > { %v1479_v63 = vpop.xlane.xlu0 %1478 }
 0x564   : > { %v1525_v19 = vsub.f32 %v4889_v55, %v1479_v63 }
 0x565   : > { %v1482_v20 = vpop.xlane.xlu1 %1481 }
 0x566   : > { %v1541_v22 = vmul.f32 1.442695, %v1525_v19  ;;  %v1526_v23 = vsub.f32 %v4893_v28, %v1482_v20 }
 0x568   : > { %3977 = vpow2.f32 %v1541_v22  ;;  %v1543_v18 = vmul.f32 1.442695, %v1526_v23 }
 0x56a   : > { %3979 = vpow2.f32 %v1543_v18 }
 0x56b   : > { %v1485_v24 = vpop.xlane.xlu0 %1484 }
 0x56c   : > { %v1527_v10 = vsub.f32 %v4897_v30, %v1485_v24 }
 0x56d   : > { %v1488_v26 = vpop.xlane.xlu1 %1487 }
 0x56e   : > { %v1545_v27 = vmul.f32 1.442695, %v1527_v10  ;;  %v1528_v57 = vsub.f32 %v4903_v37, %v1488_v26 }
 0x56f   : > { %v1491_v29 = vpop.xlane.xlu0 %1490 }
 0x570   : > { %3981 = vpow2.f32 %v1545_v27  ;;  %v1547_v32 = vmul.f32 1.442695, %v1528_v57  ;;  %v1529_v34 = vsub.f32 %v4899_v31, %v1491_v29 }
 0x571   : > { %v1494_v55 = vpop.xlane.xlu1 %1493 }
 0x572   : > { %v4958_v35 = vpop.eup %3977  ;;  %3983 = vpow2.f32 %v1547_v32  ;;  %v1549_v28 = vmul.f32 1.442695, %v1529_v34  ;;  %v1530_v39 = vsub.f32 %v4905_v38, %v1494_v55 }
 0x573   : > { %v1497_v41 = vpop.xlane.xlu0 %1496  ;;  %v1573_v30 = vsel %vm1476_vm2, %v4958_v35, 0.0 }
 0x574   : > { %v4963_v43 = vpop.eup %3979  ;;  %3985 = vpow2.f32 %v1549_v28  ;;  %v1551_v37 = vmul.f32 1.442695, %v1530_v39  ;;  %v1531_v44 = vsub.f32 %v4913_v46, %v1497_v41  ;;  %1574 = vadd.xlane.f32.xlu0 %v1573_v30 }
 0x575   : > { %v1500_v45 = vpop.xlane.xlu1 %1499  ;;  %v1576_v31 = vsel %vm1476_vm2, %v4963_v43, 0.0 }
 0x576   : > { %3987 = vpow2.f32 %v1551_v37  ;;  %v1553_v49 = vmul.f32 1.442695, %v1531_v44  ;;  %v1532_v52 = vsub.f32 %v4919_v54, %v1500_v45  ;;  %1577 = vadd.xlane.f32.xlu1 %v1576_v31 }
 0x577   : > { %v1503_v38 = vpop.xlane.xlu0 %1502 }
 0x578   : > { %3989 = vpow2.f32 %v1553_v49  ;;  %v1555_v53 = vmul.f32 1.442695, %v1532_v52  ;;  %v1533_v59 = vsub.f32 %v4915_v48, %v1503_v38 }
 0x579   : > { %v1506_v61 = vpop.xlane.xlu1 %1505 }
 0x57a   : > { %v4970_v62 = vpop.eup %3981  ;;  %3991 = vpow2.f32 %v1555_v53  ;;  %v1557_v46 = vmul.f32 1.442695, %v1533_v59  ;;  %v1534_v0 = vsub.f32 %v4921_v56, %v1506_v61 }
 0x57b   : > { %v1509_v40 = vpop.xlane.xlu0 %1508  ;;  %v1579_v2 = vsel %vm1476_vm2, %v4970_v62, 0.0 }
 0x57c   : > { %v4975_v3 = vpop.eup %3983  ;;  %3993 = vpow2.f32 %v1557_v46  ;;  %v1559_v54 = vmul.f32 1.442695, %v1534_v0  ;;  %v1535_v4 = vsub.f32 %v4929_v36, %v1509_v40  ;;  %1580 = vadd.xlane.f32.xlu0 %v1579_v2 }
 0x57d   : > { %v1512_v7 = vpop.xlane.xlu1 %1511  ;;  %v1582_v48 = vsel %vm1476_vm2, %v4975_v3, 0.0 }
 0x57e   : > { %v4980_v8 = vpop.eup %3985  ;;  %3995 = vpow2.f32 %v1559_v54  ;;  %v1561_v47 = vmul.f32 1.442695, %v1535_v4  ;;  %v1536_v56 = vsub.f32 %v4935_v42, %v1512_v7  ;;  %1583 = vadd.xlane.f32.xlu1 %v1582_v48 }
 0x57f   : > { %v1515_v11 = vpop.xlane.xlu0 %1514  ;;  %v1585_v12 = vsel %vm1476_vm2, %v4980_v8, 0.0 }
 0x580   : > { %v4985_v14 = vpop.eup %3987  ;;  %3997 = vpow2.f32 %v1561_v47  ;;  %v1563_v36 = vmul.f32 1.442695, %v1536_v56  ;;  %v1537_v6 = vsub.f32 %v4931_v1, %v1515_v11  ;;  %1586 = vadd.xlane.f32.xlu0 %v1585_v12 }
 0x581   : > { %v1518_v16 = vpop.xlane.xlu1 %1517  ;;  %v1588_v17 = vsel %vm1476_vm2, %v4985_v14, 0.0 }
 0x582   : > { %v4990_v63 = vpop.eup %3989  ;;  %3999 = vpow2.f32 %v1563_v36  ;;  %v1565_v42 = vmul.f32 1.442695, %v1537_v6  ;;  %v1538_v19 = vsub.f32 %v4937_v51, %v1518_v16  ;;  %1589 = vadd.xlane.f32.xlu1 %v1588_v17 }
 0x583   : > { %v1521_v20 = vpop.xlane.xlu0 %1520  ;;  %v1591_v22 = vsel %vm1476_vm2, %v4990_v63, 0.0 }
 0x584   : > { %v4995_v23 = vpop.eup %3991  ;;  %4001 = vpow2.f32 %v1565_v42  ;;  %v1567_v1 = vmul.f32 1.442695, %v1538_v19  ;;  %v1539_v18 = vsub.f32 %v4945_v13, %v1521_v20  ;;  %1592 = vadd.xlane.f32.xlu0 %v1591_v22 }
 0x585   : > { %v1524_v24 = vpop.xlane.xlu1 %1523  ;;  %v1594_v10 = vsel %vm1476_vm2, %v4995_v23, 0.0 }
 0x586   : > { %v5000_v26 = vpop.eup %3993  ;;  %4003 = vpow2.f32 %v1567_v1  ;;  %v1569_v51 = vmul.f32 1.442695, %v1539_v18  ;;  %v1540_v27 = vsub.f32 %v4949_v15, %v1524_v24  ;;  %1595 = vadd.xlane.f32.xlu1 %v1594_v10 }
 0x587   : > { %v1597_v57 = vsel %vm1476_vm2, %v5000_v26, 0.0 }
 0x588   : > { %v5005_v29 = vpop.eup %3995  ;;  %4005 = vpow2.f32 %v1569_v51  ;;  %v1571_v32 = vmul.f32 1.442695, %v1540_v27  ;;  %1598 = vadd.xlane.f32.xlu0 %v1597_v57 }
 0x589   : > { %v1600_v13 = vsel %vm1476_vm2, %v5005_v29, 0.0 }
 0x58a   : > { %v5009_v34 = vpop.eup %3997  ;;  %4007 = vpow2.f32 %v1571_v32  ;;  %1601 = vadd.xlane.f32.xlu1 %v1600_v13 }
 0x58b   : > { %v1603_v55 = vsel %vm1476_vm2, %v5009_v34, 0.0 }
 0x58c   : > { %v5013_v15 = vpop.eup %3999  ;;  %1604 = vadd.xlane.f32.xlu0 %v1603_v55 }
 0x58d   : > { %v1606_v28 = vsel %vm1476_vm2, %v5013_v15, 0.0 }
 0x58e   : > { %v5017_v39 = vpop.eup %4001  ;;  %1607 = vadd.xlane.f32.xlu1 %v1606_v28 }
 0x58f   : > { %v1609_v41 = vsel %vm1476_vm2, %v5017_v39, 0.0 }
 0x590   : > { %v5021_v30 = vpop.eup %4003  ;;  %1610 = vadd.xlane.f32.xlu0 %v1609_v41 }
 0x591   : > { %v1612_v37 = vsel %vm1476_vm2, %v5021_v30, 0.0 }
 0x592   : > { %v5025_v44 = vpop.eup %4005  ;;  %1613 = vadd.xlane.f32.xlu1 %v1612_v37 }
 0x593   : > { %v1615_v45 = vsel %vm1476_vm2, %v5025_v44, 0.0 }
 0x594   : > { %v5029_v31 = vpop.eup %4007  ;;  %1616 = vadd.xlane.f32.xlu0 %v1615_v45 }
 0x595   : > { %v1618_v49 = vsel %vm1476_vm2, %v5029_v31, 0.0 }
 0x596   : > { %1619 = vadd.xlane.f32.xlu1 %v1618_v49  ;;  %v3916_v49 = vld [vmem:[#allocation11 + $0x18] sm:$0xff]  }
 0x601   : > { %v1575_v52 = vpop.xlane.xlu0 %1574 }
 0x602   : > { %4009 = vrcp.f32 %v1575_v52  ;;  %v3919_v52 = vld [vmem:[#allocation11 + $0x30] sm:$0xff]  }
 0x603   : > { %v1578_v38 = vpop.xlane.xlu1 %1577 }
 0x604   : > { %4011 = vrcp.f32 %v1578_v38  ;;  %v3920_v38 = vld [vmem:[#allocation11 + $0x38] sm:$0xff]  }
 0x609   : > { %v1581_v53 = vpop.xlane.xlu0 %1580 }
 0x60a   : > { %4013 = vrcp.f32 %v1581_v53  ;;  %v3922_v53 = vld [vmem:[#allocation13 + $0x40] sm:$0xff]  }
 0x60b   : > { %v1584_v59 = vpop.xlane.xlu1 %1583 }
 0x60c   : > { %v4010_v61 = vpop.eup %4009  ;;  %4015 = vrcp.f32 %v1584_v59  ;;  %v3923_v59 = vld [vmem:[#allocation13] sm:$0xff]  }
 0x60d   : > { %v1587_v46 = vpop.xlane.xlu0 %1586  ;;  %v1637_v40 = vmul.f32 %v4010_v61, %v4958_v35  ;;  %v5083_v61 = vld [vmem:[%s5327_s20] sm:$0xff] }
 0x60e   : > { %v4012_v0 = vpop.eup %4011  ;;  %4017 = vrcp.f32 %v1587_v46  ;;  %v4337_v46 = vmov 1966171168  }
 0x60f   : > { %v1638_v2 = vmul.f32 %v4012_v0, %v4963_v43  ;;  %v1590_v54 = vpop.xlane.xlu1 %1589  ;;  %v2170_v0 = vunpack.c.l.s4 %v4337_v46 }
 0x610   : > { %4019 = vrcp.f32 %v1590_v54 }
 0x611   : > { %v1593_v4 = vpop.xlane.xlu0 %1592  ;;  %v1653_v7 = vpack.c.bf16 %v1638_v2, %v1637_v40  ;;  %v5088_v2 = vld [vmem:[%s5327_s20 + $0x8] sm:$0xff] }
 0x612   : > { %4021 = vrcp.f32 %v1593_v4 }
 0x613   : > { %3676 = vmatmul.mubr.msk.bf16.vlgmr.msra.gmra.mrb[20].mxu0 %vm1476_vm2, %v1653_v7  ;;  %v1596_v48 = vpop.xlane.xlu1 %1595 }
 0x614   : > { %v4014_v47 = vpop.eup %4013  ;;  %3686 = vmatpush3.bf16.msra.mxu0 %v4826_v33  ;;  %4023 = vrcp.f32 %v1596_v48  ;;  %3687 = vmatprep.mubr.msk.bf16.mxu0 %vm4336_vm0, %v4335_v25 }
 0x615   : > { %v1599_v56 = vpop.xlane.xlu0 %1598  ;;  %3697 = vmatprep.subr.bf16.mxu0 %v4335_v25  ;;  %v1639_v43 = vmul.f32 %v4014_v47, %v4970_v62 }
 0x616   : > { %v4016_v35 = vpop.eup %4015  ;;  %4025 = vrcp.f32 %v1599_v56 }
 0x617   : > { %v1640_v11 = vmul.f32 %v4016_v35, %v4975_v3  ;;  %v1602_v12 = vpop.xlane.xlu1 %1601  ;;  %v2171_v35 = vunpack.c.0.s8 %v2170_v0 }
 0x618   : > { %v4018_v36 = vpop.eup %4017  ;;  %4027 = vrcp.f32 %v1602_v12 }
 0x619   : > { %v1605_v6 = vpop.xlane.xlu0 %1604  ;;  %v1654_v16 = vpack.c.bf16 %v1640_v11, %v1639_v43  ;;  %v1641_v33 = vmul.f32 %v4018_v36, %v4980_v8 }
 0x61a   : > { %v4020_v17 = vpop.eup %4019  ;;  %4029 = vrcp.f32 %v1605_v6  ;;  %v5094_v6 = vsub.s32 %v2171_v35, %v4803_v9 }
 0x61b   : > { %v1642_v42 = vmul.f32 %v4020_v17, %v4985_v14  ;;  %3682 = vmatmul.mubr.msk.bf16.vlgmr.msra.gmra.mrb[36].mxu1 %vm1476_vm2, %v1654_v16  ;;  %v1608_v19 = vpop.xlane.xlu1 %1607 }
 0x61c   : > { %v4022_v20 = vpop.eup %4021  ;;  %3692 = vmatpush3.bf16.msra.mxu1 %v4834_v58  ;;  %4031 = vrcp.f32 %v1608_v19  ;;  %3693 = vmatprep.mubr.msk.bf16.mxu1 %vm4336_vm0, %v4335_v25 }
 0x61d   : > { %v1611_v62 = vpop.xlane.xlu0 %1610  ;;  %v1655_v3 = vpack.c.bf16 %v1642_v42, %v1641_v33  ;;  %3703 = vmatprep.subr.bf16.mxu1 %v4335_v25  ;;  %v1643_v8 = vmul.f32 %v4022_v20, %v4990_v63 }
 0x61e   : > { %v4024_v22 = vpop.eup %4023  ;;  %4033 = vrcp.f32 %v1611_v62 }
 0x61f   : > { %v1644_v14 = vmul.f32 %v4024_v22, %v4995_v23  ;;  %3688 = vmatmul.mubr.msk.bf16.vlgmr.msra.gmra.mrb[24].mxu0 %vm1476_vm2, %v1655_v3  ;;  %v1614_v1 = vpop.xlane.xlu1 %1613 }
 0x620   : > { %v4026_v18 = vpop.eup %4025  ;;  %3698 = vmatpush3.bf16.msra.mxu0 %v4842_v5  ;;  %4035 = vrcp.f32 %v1614_v1  ;;  %3699 = vmatprep.mubr.msk.bf16.mxu0 %vm4336_vm0, %v4335_v25 }
 0x621   : > { %v1617_v58 = vpop.xlane.xlu0 %1616  ;;  %v1656_v24 = vpack.c.bf16 %v1644_v14, %v1643_v8  ;;  %3709 = vmatprep.subr.bf16.mxu0 %v4335_v25  ;;  %v1645_v63 = vmul.f32 %v4026_v18, %v5000_v26 }
 0x622   : > { %v4028_v10 = vpop.eup %4027  ;;  %4037 = vrcp.f32 %v1617_v58 }
 0x623   : > { %v1646_v23 = vmul.f32 %v4028_v10, %v5005_v29  ;;  %3694 = vmatmul.mubr.msk.bf16.vlgmr.msra.gmra.mrb[40].mxu1 %vm1476_vm2, %v1656_v24  ;;  %v1620_v51 = vpop.xlane.xlu1 %1619 }
 0x624   : > { %v4030_v27 = vpop.eup %4029  ;;  %3704 = vmatpush3.bf16.msra.mxu1 %v4852_v60  ;;  %4039 = vrcp.f32 %v1620_v51  ;;  %3705 = vmatprep.mubr.msk.bf16.mxu1 %vm4336_vm0, %v4335_v25 }
 0x625   : > { %v1657_v5 = vpack.c.bf16 %v1646_v23, %v1645_v63  ;;  %3715 = vmatprep.subr.bf16.mxu1 %v4335_v25  ;;  %v1647_v32 = vmul.f32 %v4030_v27, %v5009_v34 }
 0x626   : > { %v4032_v57 = vpop.eup %4031 }
 0x627   : > { %v1648_v26 = vmul.f32 %v4032_v57, %v5013_v15  ;;  %3700 = vmatmul.mubr.msk.bf16.vlgmr.msra.gmra.mrb[28].mxu0 %vm1476_vm2, %v1657_v5 }
 0x628   : > { %v4034_v29 = vpop.eup %4033  ;;  %3710 = vmatpush3.bf16.msra.mxu0 %v4861_v50  ;;  %3711 = vmatprep.mubr.msk.bf16.mxu0 %vm4336_vm0, %v4335_v25 }
 0x629   : > { %v1658_v60 = vpack.c.bf16 %v1648_v26, %v1647_v32  ;;  %v1649_v55 = vmul.f32 %v4034_v29, %v5017_v39  ;;  %v3913_v39 = vld [vmem:[#allocation11] sm:$0xff]  }
 0x62a   : > { %v4036_v13 = vpop.eup %4035  ;;  %3721 = vmatprep.subr.bf16.mxu0 %v3913_v39 }
 0x62b   : > { %v1650_v28 = vmul.f32 %v4036_v13, %v5021_v30  ;;  %3706 = vmatmul.mubr.msk.bf16.vlgmr.msra.gmra.mrb[44].mxu1 %vm1476_vm2, %v1658_v60  ;;  %v3914_v30 = vld [vmem:[#allocation11 + $0x8] sm:$0xff]  }
 0x62c   : > { %v4038_v41 = vpop.eup %4037  ;;  %3716 = vmatpush3.bf16.msra.mxu1 %v4871_v21  ;;  %3717 = vmatprep.mubr.msk.bf16.mxu1 %vm4336_vm0, %v4335_v25  ;;  %v3915_v21 = vld [vmem:[#allocation11 + $0x10] sm:$0xff]  }
 0x62d   : > { %v1659_v34 = vpack.c.bf16 %v1650_v28, %v1649_v55  ;;  %v1651_v50 = vmul.f32 %v4038_v41, %v5025_v44  ;;  %v3917_v44 = vld [vmem:[#allocation11 + $0x20] sm:$0xff]   ;;  %3570 = vmatprep.subr.bf16.mxu1 %v3922_v53 }
 0x62e   : > { %v4040_v15 = vpop.eup %4039 }
 0x62f   : > { %v1652_v37 = vmul.f32 %v4040_v15, %v5029_v31  ;;  %3712 = vmatmul.mubr.msk.bf16.vlgmr.msra.gmra.mrb[32].mxu0 %vm1476_vm2, %v1659_v34  ;;  %v3918_v31 = vld [vmem:[#allocation11 + $0x28] sm:$0xff]  }
 0x630   : > { %3722 = vmatpush3.bf16.msra.mxu0 %v3913_v39 }
 0x631   : > { %v1660_v45 = vpack.c.bf16 %v1652_v37, %v1651_v50  ;;  %3723 = vmatprep.subr.bf16.mxu0 %v3914_v30 }
 0x633   : > { %3718 = vmatmul.mubr.msk.bf16.vlgmr.msra.gmra.mrb[48].mxu1 %vm1476_vm2, %v1660_v45 }
 0x634   : > { %3724 = vmatpush3.bf16.msra.mxu0 %v3914_v30  ;;  %3571 = vmatpush3.bf16.msra.mxu1 %v3923_v59 }
 0x635   : > { %3725 = vmatprep.subr.bf16.mxu0 %v3915_v21 }
 0x638   : > { %3726 = vmatpush3.bf16.msra.mxu0 %v3915_v21 }
 0x639   : > { %3727 = vmatprep.subr.bf16.mxu0 %v3916_v49 }
 0x63c   : > { %3728 = vmatpush3.bf16.msra.mxu0 %v3916_v49 }
 0x63d   : > { %3729 = vmatprep.subr.bf16.mxu0 %v3917_v44 }
 0x640   : > { %3730 = vmatpush3.bf16.msra.mxu0 %v3917_v44 }
 0x641   : > { %3731 = vmatprep.subr.bf16.mxu0 %v3918_v31 }
 0x644   : > { %3732 = vmatpush3.bf16.msra.mxu0 %v3918_v31 }
 0x645   : > { %3733 = vmatprep.subr.bf16.mxu0 %v3919_v52 }
 0x648   : > { %3734 = vmatpush3.bf16.msra.mxu0 %v3919_v52 }
 0x649   : > { %3735 = vmatprep.subr.bf16.mxu0 %v3920_v38 }
 0x64c   : > { %3736 = vmatpush3.bf16.msra.mxu0 %v3920_v38 }
 0x64d   : > { %3741 = vmatprep.subr.bf16.mxu0 %v4335_v25 }
 0x6e6   : > { %v1702_v40 = vpop.f32.mrb[20].mxu0 }
 0x6e7   : > { %v2040_v54 = vmul.f32 %v5083_v61, %v1702_v40  ;;  %v3677_v4 = vpop.f32.mrb[21].mxu0 }
 0x6e8   : > { %v1705_v7 = vpop.f32.mrb[22].mxu0 }
 0x6e9   : > { %v2064_v48 = vrot.slane %v2040_v54, 3  ;;  %v2041_v47 = vmul.f32 %v5088_v2, %v1705_v7  ;;  %v3678_v56 = vpop.f32.mrb[23].mxu0  ;;  %v2097_v11 = vrot.slane %v2040_v54, 6 }
 0x6eb   : > { %v2080_v43 = vadd.f32 %v2064_v48, %v2040_v54  ;;  %v2098_v12 = vrot.slane %v2041_v47, 6  ;;  %v2137_v17 = vrot.slane %v2041_v47, 1 }
 0x6ed   : > { %v2099_v36 = vsel %vm2096_vm3, %v2097_v11, %v2098_v12 }
 0x6ee   : > { %v2129_v16 = vadd.f32 %v2099_v36, %v2080_v43  ;;  %v1749_v33 = vpop.f32.mrb[36].mxu1 }
 0x6ef   : > { %v2042_v42 = vmul.f32 %v5083_v61, %v1749_v33  ;;  %v3683_v19 = vpop.f32.mrb[37].mxu1 }
 0x6f0   : > { %v2153_v20 = vadd.f32 %v2137_v17, %v2129_v16  ;;  %v1752_v62 = vpop.f32.mrb[38].mxu1 }
 0x6f1   : > { %v2065_v3 = vrot.slane %v2042_v42, 3  ;;  %v2043_v22 = vmul.f32 %v5088_v2, %v1752_v62  ;;  %v3684_v8 = vpop.f32.mrb[39].mxu1  ;;  %v2100_v58 = vrot.slane %v2042_v42, 6 }
 0x6f2   : > { %v2175_v14 = vrot.slane %v2153_v20, %v5094_v6  ;;  %v1796_v1 = vpop.f32.mrb[24].mxu0 }
 0x6f3   : > { %v2081_v18 = vadd.f32 %v2065_v3, %v2042_v42  ;;  %v2101_v24 = vrot.slane %v2043_v22, 6  ;;  %v2044_v9 = vmul.f32 %v5083_v61, %v1796_v1  ;;  %v3689_v10 = vpop.f32.mrb[25].mxu0  ;;  %v2138_v29 = vrot.slane %v2043_v22, 1 }
 0x6f4   : > { %v2176_v63 = vcombine.high %v2175_v14, %v2175_v14  ;;  %v1799_v23 = vpop.f32.mrb[26].mxu0  ;;  %v2183_v32 = vrot.slane %v2175_v14, %v5094_v6 }
 0x6f5   : > { %v2102_v51 = vsel %vm2096_vm3, %v2100_v58, %v2101_v24  ;;  %v2066_v27 = vrot.slane %v2044_v9, 3  ;;  %v2045_v5 = vmul.f32 %v5088_v2, %v1799_v23  ;;  %v3690_v57 = vpop.f32.mrb[27].mxu0  ;;  %v2103_v55 = vrot.slane %v2044_v9, 6 }
 0x6f6   : > { %v2130_v26 = vadd.f32 %v2102_v51, %v2081_v18  ;;  %v1843_v60 = vpop.f32.mrb[40].mxu1  ;;  %v2190_v15 = vrot.slane %v2176_v63, %v5094_v6  ;;  %v2191_v49 = vcombine.high %v2183_v32, %v2183_v32 }
 0x6f7   : > { %v2082_v13 = vadd.f32 %v2066_v27, %v2044_v9  ;;  %v2104_v28 = vrot.slane %v2045_v5, 6  ;;  %v2046_v41 = vmul.f32 %v5083_v61, %v1843_v60  ;;  %v3695_v34 = vpop.f32.mrb[41].mxu1  ;;  %v2139_v52 = vrot.slane %v2045_v5, 1 }
 0x6f8   : > { %v2154_v50 = vadd.f32 %v2138_v29, %v2130_v26  ;;  %v1846_v37 = vpop.f32.mrb[42].mxu1  ;;  %v2353_v54 = vcombine.low %v2183_v32, %v2190_v15 }
 0x6f9   : > { %v2105_v45 = vsel %vm2096_vm3, %v2103_v55, %v2104_v28  ;;  %v2067_v39 = vrot.slane %v2046_v41, 3  ;;  %v2047_v30 = vmul.f32 %v5088_v2, %v1846_v37  ;;  %v3696_v21 = vpop.f32.mrb[43].mxu1  ;;  %v2106_v59 = vrot.slane %v2046_v41, 6 }
 0x6fa   : > { %v2198_v44 = vrot.slane %v2154_v50, %v5094_v6  ;;  %v2131_v31 = vadd.f32 %v2105_v45, %v2082_v13  ;;  %v1890_v38 = vpop.f32.mrb[28].mxu0  ;;  %v5121_v58 = vrot.slane %v2353_v54, %v5094_v6 }
 0x6fb   : > { %v2083_v53 = vadd.f32 %v2067_v39, %v2046_v41  ;;  %v2107_v46 = vrot.slane %v2047_v30, 6  ;;  %v2048_v0 = vmul.f32 %v5083_v61, %v1890_v38  ;;  %v3701_v40 = vpop.f32.mrb[29].mxu0  ;;  %v2140_v35 = vrot.slane %v2047_v30, 1 }
 0x6fc   : > { %v2199_v4 = vcombine.high %v2198_v44, %v2198_v44  ;;  %v2206_v7 = vrot.slane %v2198_v44, %v5094_v6  ;;  %v2155_v48 = vadd.f32 %v2139_v52, %v2131_v31  ;;  %v1893_v47 = vpop.f32.mrb[30].mxu0 }
 0x6fd   : > { %v2108_v56 = vsel %vm2096_vm3, %v2106_v59, %v2107_v46  ;;  %v2068_v43 = vrot.slane %v2048_v0, 3  ;;  %v2049_v11 = vmul.f32 %v5088_v2, %v1893_v47  ;;  %v3702_v12 = vpop.f32.mrb[31].mxu0  ;;  %v2109_v62 = vrot.slane %v2048_v0, 6 }
 0x6fe   : > { %v2213_v36 = vrot.slane %v2199_v4, %v5094_v6  ;;  %v2214_v16 = vcombine.high %v2206_v7, %v2206_v7  ;;  %v5113_v17 = vcombine.low %v2191_v49, %v2206_v7  ;;  %v2221_v33 = vrot.slane %v2155_v48, %v5094_v6  ;;  %v1937_v42 = vpop.f32.mrb[44].mxu1 }
 0x6ff   : > { %v2132_v19 = vadd.f32 %v2108_v56, %v2083_v53  ;;  %v2084_v20 = vadd.f32 %v2068_v43, %v2048_v0  ;;  %v2110_v3 = vrot.slane %v2049_v11, 6  ;;  %v3707_v22 = vpop.f32.mrb[45].mxu1  ;;  %v2050_v1 = vmul.f32 %v5083_v61, %v1937_v42 }
 0x700   : > { %v2222_v8 = vcombine.high %v2221_v33, %v2221_v33  ;;  %v5117_v14 = vrot.slane %v2221_v33, %v5094_v6  ;;  %v1940_v18 = vpop.f32.mrb[46].mxu1  ;;  %v2141_v10 = vrot.slane %v2049_v11, 1  ;;  %v5125_v51 = vcombine.low %v2213_v36, %v2214_v16 }
 0x701   : > { %v2156_v24 = vadd.f32 %v2140_v35, %v2132_v19  ;;  %v2111_v9 = vsel %vm2096_vm3, %v2109_v62, %v2110_v3  ;;  %v2051_v63 = vmul.f32 %v5088_v2, %v1940_v18  ;;  %v3708_v23 = vpop.f32.mrb[47].mxu1  ;;  %v2069_v57 = vrot.slane %v2050_v1, 3 }
 0x702   : > { %v2236_v27 = vrot.slane %v2222_v8, %v5094_v6  ;;  %v2133_v5 = vadd.f32 %v2111_v9, %v2084_v20  ;;  %v1984_v32 = vpop.f32.mrb[32].mxu0  ;;  %v2237_v26 = vcombine.high %v5117_v14, %v5117_v14  ;;  %v2112_v60 = vrot.slane %v2050_v1, 6 }
 0x703   : > { %v2244_v29 = vrot.slane %v2156_v24, %v5094_v6  ;;  %v2113_v13 = vrot.slane %v2051_v63, 6  ;;  %v3713_v55 = vpop.f32.mrb[33].mxu0  ;;  %v2085_v41 = vadd.f32 %v2069_v57, %v2050_v1  ;;  %v2142_v34 = vrot.slane %v2051_v63, 1 }
 0x704   : > { %v2157_v28 = vadd.f32 %v2141_v10, %v2133_v5  ;;  %v2052_v15 = vmul.f32 %v5083_v61, %v1984_v32  ;;  %v1987_v50 = vpop.f32.mrb[34].mxu0  ;;  %v2356_v56 = vcombine.low %v5117_v14, %v2236_v27  ;;  %v2370_v12 = vrot.slane %v5113_v17, %v5094_v6 }
 0x705   : > { %v2245_v37 = vcombine.high %v2244_v29, %v2244_v29  ;;  %v2252_v45 = vrot.slane %v2244_v29, %v5094_v6  ;;  %v2114_v39 = vsel %vm2096_vm3, %v2112_v60, %v2113_v13  ;;  %v2053_v30 = vmul.f32 %v5088_v2, %v1987_v50  ;;  %v3714_v21 = vpop.f32.mrb[35].mxu0 }
 0x706   : > { %v2267_v49 = vrot.slane %v2157_v28, %v5094_v6  ;;  %v2134_v44 = vadd.f32 %v2114_v39, %v2085_v41  ;;  %v2070_v31 = vrot.slane %v2052_v15, 3  ;;  %v2115_v52 = vrot.slane %v2052_v15, 6  ;;  %v2031_v38 = vpop.f32.mrb[48].mxu1 }
 0x707   : > { %v2259_v53 = vrot.slane %v2245_v37, %v5094_v6  ;;  %v2260_v59 = vcombine.high %v2252_v45, %v2252_v45  ;;  %v2402_v46 = vcombine.low %v2237_v26, %v2252_v45  ;;  %v2116_v0 = vrot.slane %v2053_v30, 6  ;;  %v3719_v40 = vpop.f32.mrb[49].mxu1 }
 0x708   : > { %v2268_v54 = vcombine.high %v2267_v49, %v2267_v49  ;;  %v2275_v4 = vrot.slane %v2267_v49, %v5094_v6  ;;  %v2158_v7 = vadd.f32 %v2142_v34, %v2134_v44  ;;  %v2086_v48 = vadd.f32 %v2070_v31, %v2052_v15  ;;  %v2034_v47 = vpop.f32.mrb[50].mxu1 }
 0x709   : > { %v2117_v35 = vsel %vm2096_vm3, %v2115_v52, %v2116_v0  ;;  %v2054_v43 = vmul.f32 %v5083_v61, %v2031_v38  ;;  %v3720_v11 = vpop.f32.mrb[51].mxu1  ;;  %v2143_v42 = vrot.slane %v2053_v30, 1  ;;  %v2403_v19 = vcombine.low %v2259_v53, %v2260_v59 }
 0x70a   : > { %v2282_v36 = vrot.slane %v2268_v54, %v5094_v6  ;;  %v2290_v16 = vrot.slane %v2158_v7, %v5094_v6  ;;  %v2135_v33 = vadd.f32 %v2117_v35, %v2086_v48  ;;  %v2283_v20 = vcombine.high %v2275_v4, %v2275_v4 }
 0x70b   : > { %v2071_v62 = vrot.slane %v2054_v43, 3  ;;  %v2055_v3 = vmul.f32 %v5088_v2, %v2034_v47  ;;  %v2118_v61 = vrot.slane %v2054_v43, 6  ;;  %v2377_v17 = vrot.slane %v5125_v51, %v5094_v6 }
 0x70c   : > { %v2291_v22 = vcombine.high %v2290_v16, %v2290_v16  ;;  %v2298_v8 = vrot.slane %v2290_v16, %v5094_v6  ;;  %v2159_v14 = vadd.f32 %v2143_v42, %v2135_v33  ;;  %v2384_v24 = vrot.slane %v2356_v56, %v5094_v6  ;;  %v3924_v33 = vld [vmem:[#allocation13 + $0x88] sm:$0xff]  }
 0x70d   : > { %v2087_v1 = vadd.f32 %v2071_v62, %v2054_v43  ;;  %v2119_v18 = vrot.slane %v2055_v3, 6  ;;  %v2404_v9 = vcombine.low %v2275_v4, %v2282_v36  ;;  %v2385_v5 = vcombine.low %v5121_v58, %v2370_v12  ;;  %v3921_v36 = vld [vmem:[#allocation13 + $0x80] sm:$0xff]   ;;  %v3925_v42 = vld [vmem:[#allocation13 + $0x48] sm:$0xff]   ;;  %v3928_v62 = vld [vmem:[#allocation13 + $0x50] sm:$0xff]  }
 0x70e   : > { %v2305_v10 = vrot.slane %v2291_v22, %v5094_v6  ;;  %v2405_v63 = vcombine.low %v2283_v20, %v2298_v8  ;;  %v2313_v23 = vrot.slane %v2159_v14, %v5094_v6  ;;  %v2306_v27 = vcombine.high %v2298_v8, %v2298_v8  ;;  %3572 = vmatprep.subr.bf16.mxu1 %v3925_v42  ;;  %v3927_v20 = vld [vmem:[#allocation13 + $0x90] sm:$0xff]   ;;  %v3930_v22 = vld [vmem:[#allocation13 + $0x98] sm:$0xff]  }
 0x70f   : > { %v2120_v2 = vsel %vm2096_vm3, %v2118_v61, %v2119_v18  ;;  %v2386_v57 = vcombine.low %v2377_v17, %v2384_v24  ;;  %v2144_v29 = vrot.slane %v2055_v3, 1  ;;  %v2412_v60 = vrot.slane %v2402_v46, %v5094_v6  ;;  %v3929_v3 = vld [vmem:[#allocation13 + $0x10] sm:$0xff]   ;;  %v3931_v8 = vld [vmem:[#allocation13 + $0x58] sm:$0xff]   ;;  %v3933_v61 = vld [vmem:[#allocation13 + $0xa0] sm:$0xff]  }
 0x710   : > { %v2314_v32 = vcombine.high %v2313_v23, %v2313_v23  ;;  %v2136_v26 = vadd.f32 %v2120_v2, %v2087_v1  ;;  %v2321_v51 = vrot.slane %v2313_v23, %v5094_v6  ;;  %v2393_v13 = vrot.slane %v2385_v5, %v5094_v6  ;;  %v3932_v14 = vld [vmem:[#allocation13 + $0x18] sm:$0xff]   ;;  %v3934_v1 = vld [vmem:[#allocation13 + $0x60] sm:$0xff]   ;;  %v3936_v17 = vld [vmem:[#allocation13 + $0xa8] sm:$0xff]  }
 0x711   : > { %v2400_v55 = vrot.slane %v2386_v57, %v5094_v6  ;;  %v2419_v28 = vrot.slane %v2403_v19, %v5094_v6  ;;  %v2426_v15 = vrot.slane %v2404_v9, %v5094_v6  ;;  %v2433_v58 = vrot.slane %v2405_v63, %v5094_v6  ;;  %v3926_v19 = vld [vmem:[#allocation13 + $0x8] sm:$0xff]   ;;  %v3935_v18 = vld [vmem:[#allocation13 + $0x20] sm:$0xff]   ;;  %v3939_v63 = vld [vmem:[#allocation13 + $0xb0] sm:$0xff]  }
 0x712   : > { %v2328_v41 = vrot.slane %v2314_v32, %v5094_v6  ;;  %v2160_v34 = vadd.f32 %v2144_v29, %v2136_v26  ;;  %v2451_v50 = vcombine.low %v2305_v10, %v2306_v27  ;;  %v2329_v49 = vcombine.high %v2321_v51, %v2321_v51  ;;  %3573 = vmatpush3.bf16.msra.mxu1 %v3926_v19  ;;  %v3937_v24 = vld [vmem:[#allocation13 + $0x68] sm:$0xff]   ;;  %v3940_v10 = vld [vmem:[#allocation13 + $0x70] sm:$0xff]   ;;  %v3943_v27 = vld [vmem:[#allocation13 + $0x78] sm:$0xff]  }
 0x713   : > { %v2401_v37 = vcombine.low %v2393_v13, %v2400_v55  ;;  %v2434_v45 = vcombine.low %v2412_v60, %v2419_v28  ;;  %v2435_v21 = vcombine.low %v2426_v15, %v2433_v58  ;;  %3574 = vmatprep.subr.bf16.mxu1 %v3928_v62  ;;  %v3938_v9 = vld [vmem:[#allocation13 + $0x28] sm:$0xff]   ;;  %v3941_v23 = vld [vmem:[#allocation13 + $0x30] sm:$0xff]   ;;  %v3942_v2 = vld [vmem:[#allocation13 + $0xb8] sm:$0xff]  }
 0x714   : > { %v2452_v39 = vcombine.low %v2321_v51, %v2328_v41  ;;  %v2336_v30 = vrot.slane %v2160_v34, %v5094_v6  ;;  %v2461_v59 = vrot.slane %v2451_v50, %v5094_v6  ;;  %v3944_v5 = vld [vmem:[#allocation13 + $0x38] sm:$0xff]  }
 0x715   : > { %v2442_v44 = vrot.slane %v2434_v45, %v5094_v6  ;;  %v2449_v53 = vrot.slane %v2435_v21, %v5094_v6  ;;  %v3457_v57 = vld [vmem:[%s5328_s15] ss:$0 sm:$0xff]  ;;  %s3253_s15 = sshll.u32 %s541_s9, 4  ;;  %s5237_s15 = int_to_ptr.vmem [resolvable:$true] %s3253_s15 }
 0x716   : > { %v2468_v31 = vrot.slane %v2452_v39, %v5094_v6  ;;  %v2337_v52 = vcombine.high %v2336_v30, %v2336_v30  ;;  %v2344_v38 = vrot.slane %v2336_v30, %v5094_v6  ;;  %3575 = vmatpush3.bf16.msra.mxu1 %v3929_v3  ;;  %s4243_s22 = scalar_lea.vmem %s5237_s15, 128  ;;  %p4250_p11 = scmp.lt.s32.totalorder %s5237_s15, %s4248_s24 }
 0x717   : > { %v2450_v54 = vcombine.low %v2442_v44, %v2449_v53  ;;  %3576 = vmatprep.subr.bf16.mxu1 %v3931_v8  ;;  %p4244_p6 = scmp.ne.s32.totalorder %s5237_s15, %s4243_s22  ;;  %p4251_p12 = scmp.lt.s32.totalorder %s4249_s18, %s4243_s22 }
 0x718   : > { %v2351_v46 = vrot.slane %v2337_v52, %v5094_v6  ;;  %v2352_v0 = vcombine.high %v2344_v38, %v2344_v38  ;;  %v2453_v40 = vcombine.low %v2329_v49, %v2344_v38  ;;  %v2483_v4 = vcombine.low %v2461_v59, %v2468_v31 }
 0x719   : > { %v2503_v48 = vpack.c.bf16 %v2450_v54, %v2401_v37  ;;  %p4245_p10 = pnand %p4244_p6, %p5332_p5  ;;  %p4252_p13 = por %p4251_p12, %p4250_p11 }
 0x71a   : > { %v2454_v7 = vcombine.low %v2351_v46, %v2352_v0  ;;  %v2475_v47 = vrot.slane %v2453_v40, %v5094_v6  ;;  %v2491_v43 = vrot.slane %v2483_v4, %v5094_v6  ;;  %3577 = vmatpush3.bf16.msra.mxu1 %v3932_v14 }
 0x71b   : > { %3737 = vmatprep.mubr.bf16.mxu0 %v2503_v48  ;;  %3578 = vmatprep.subr.bf16.mxu1 %v3934_v1  ;;  %p4246_p1 = pneg %p4245_p10 }
 0x71c   : > { %v2482_v56 = vrot.slane %v2454_v7, %v5094_v6 }
 0x71d   : > { %p4253_p8 = pnand %p4252_p13, %p4246_p1 }
 0x71e   : > { %v2484_v35 = vcombine.low %v2475_v47, %v2482_v56  ;;  %3579 = vmatpush3.bf16.msra.mxu1 %v3935_v18 }
 0x71f   : > { %3580 = vmatprep.subr.bf16.mxu1 %v3937_v24 }
 0x720   : > { %v2498_v11 = vrot.slane %v2484_v35, %v5094_v6 }
 0x722   : > { %v2499_v12 = vcombine.low %v2491_v43, %v2498_v11  ;;  %3581 = vmatpush3.bf16.msra.mxu1 %v3938_v9 }
 0x723   : > { %3582 = vmatprep.subr.bf16.mxu1 %v3940_v10 }
 0x724   : > { %v2504_v16 = vpack.c.bf16 %v2499_v12, %v2499_v12 }
 0x726   : > { %3738 = vmatmul.mubr.bf16.vlgmr.msra.gmra.mrb[36].mxu0 %v2504_v16  ;;  %3583 = vmatpush3.bf16.msra.mxu1 %v3941_v23 }
 0x727   : > { %3742 = vmatpush3.bf16.msra.mxu0 %v3921_v36  ;;  %3757 = vmatprep.mubr.msk.bf16.mxu0 %vm4336_vm0, %v4335_v25 }
 0x728   : > { %3743 = vmatprep.subr.bf16.mxu0 %v4335_v25  ;;  %3584 = vmatprep.subr.bf16.mxu1 %v3943_v27 }
 0x72a   : > { %3585 = vmatpush3.bf16.msra.mxu1 %v3944_v5 }
 0x72b   : > { %3744 = vmatpush3.bf16.msra.mxu0 %v3924_v33 }
 0x72c   : > { %3745 = vmatprep.subr.bf16.mxu0 %v4335_v25 }
 0x72f   : > { %3746 = vmatpush3.bf16.msra.mxu0 %v3927_v20 }
 0x730   : > { %3747 = vmatprep.subr.bf16.mxu0 %v4335_v25 }
 0x733   : > { %3748 = vmatpush3.bf16.msra.mxu0 %v3930_v22 }
 0x734   : > { %3749 = vmatprep.subr.bf16.mxu0 %v4335_v25 }
 0x737   : > { %3750 = vmatpush3.bf16.msra.mxu0 %v3933_v61 }
 0x738   : > { %3751 = vmatprep.subr.bf16.mxu0 %v4335_v25 }
 0x73b   : > { %3752 = vmatpush3.bf16.msra.mxu0 %v3936_v17 }
 0x73c   : > { %3753 = vmatprep.subr.bf16.mxu0 %v4335_v25 }
 0x73f   : > { %3754 = vmatpush3.bf16.msra.mxu0 %v3939_v63 }
 0x740   : > { %3755 = vmatprep.subr.bf16.mxu0 %v4335_v25 }
 0x743   : > { %3756 = vmatpush3.bf16.msra.mxu0 %v3942_v2 }
 0x7f9   : > { %v3739_v32 = vpop.f32.mrb[36].mxu0 }
 0x7fa   : > { %v2619_v26 = vadd.f32 %v3739_v32, %v3457_v57  ;;  %v2610_v29 = vpop.f32.mrb[37].mxu0 }
 0x7fb   : > { %v2611_v60 = vadd.f32 %v3457_v57, %v2610_v29  ;;  %v3740_v51 = vpop.f32.mrb[38].mxu0 }
 0x7fc   : > { %v2725_v13 = vcombine.high %v2619_v26, %v2619_v26  ;;  %v2732_v55 = vrot.slane %v2619_v26, %v5094_v6  ;;  %v2613_v28 = vpop.f32.mrb[39].mxu0 }
 0x7fd   : > { %v2627_v41 = vcombine.high %v2611_v60, %v2611_v60  ;;  %v2634_v25 = vrot.slane %v2611_v60, %v5094_v6  ;;  %v2614_v34 = vadd.f32 %v3457_v57, %v2613_v28 }
 0x7fe   : > { %v2739_v15 = vrot.slane %v2725_v13, %v5094_v6  ;;  %v2740_v58 = vcombine.high %v2732_v55, %v2732_v55  ;;  %v2748_v50 = vrot.slane %v2732_v55, %v5094_v6 }
 0x7ff   : > { %v2641_v37 = vrot.slane %v2627_v41, %v5094_v6  ;;  %v2642_v45 = vcombine.high %v2634_v25, %v2634_v25  ;;  %v2650_v39 = vrot.slane %v2634_v25, %v5094_v6  ;;  %v2676_v30 = vcombine.high %v2614_v34, %v2614_v34 }
 0x800   : > { %v2741_v21 = vcombine.high %v2739_v15, %v2739_v15  ;;  %v2755_v49 = vrot.slane %v2739_v15, %v5094_v6  ;;  %v2762_v44 = vrot.slane %v2740_v58, %v5094_v6  ;;  %v2770_v59 = vcombine.high %v2748_v50, %v2748_v50 }
 0x801   : > { %v2643_v31 = vcombine.high %v2641_v37, %v2641_v37  ;;  %v2657_v52 = vrot.slane %v2641_v37, %v5094_v6  ;;  %v2664_v38 = vrot.slane %v2642_v45, %v5094_v6  ;;  %v2683_v46 = vrot.slane %v2614_v34, %v5094_v6 }
 0x802   : > { %v2769_v53 = vrot.slane %v2741_v21, %v5094_v6  ;;  %v2690_v0 = vrot.slane %v2676_v30, %v5094_v6  ;;  %v3467_v40 = vcombine.high %v2762_v44, %v2755_v49  ;;  %v2672_v4 = vcombine.high %v2650_v39, %v2650_v39 }
 0x803   : > { %v2671_v54 = vrot.slane %v2643_v31, %v5094_v6  ;;  %v2674_v7 = vcombine.high %v2664_v38, %v2664_v38  ;;  %v2673_v47 = vcombine.high %v2657_v52, %v2657_v52  ;;  %v2691_v56 = vcombine.high %v2683_v46, %v2683_v46 }
 0x804   : > { %v2773_v48 = vcombine.high %v2769_v53, %v2769_v53  ;;  %v2692_v35 = vcombine.high %v2690_v0, %v2690_v0  ;;  %v2824_v11 = vcombine.low %v2664_v38, %v2657_v52  ;;  %v2699_v12 = vrot.slane %v2683_v46, %v5094_v6 }
 0x805   : > { %v2774_v43 = vcombine.low %v2650_v39, %v2674_v7  ;;  %v2706_v36 = vrot.slane %v2690_v0, %v5094_v6  ;;  %v2777_v16 = vcombine.low %v2770_v59, %v2769_v53  ;;  %v2713_v42 = vrot.slane %v2691_v56, %v5094_v6  ;;  %v3468_v53 = vld [vmem:[%s5329_s23] ss:$0 sm:$0xff]  ;;  %s5331_s23 = sld [smem:[#allocation25_spill]] }
 0x806   : > { %v2877_v33 = vcombine.low %v2755_v49, %v2773_v48  ;;  %v2720_v19 = vrot.slane %v2692_v35, %v5094_v6  ;;  %v2874_v62 = vcombine.low %v2672_v4, %v2671_v54  ;;  %v3466_v22 = vcombine.high %v2671_v54, %v2699_v12 }
 0x807   : > { %v2784_v20 = vrot.slane %v2774_v43, %v5094_v6  ;;  %v2722_v3 = vcombine.high %v2706_v36, %v2706_v36  ;;  %v2723_v14 = vcombine.high %v2713_v42, %v2713_v42  ;;  %v2775_v1 = vcombine.low %v2673_v47, %v2713_v42  ;;  %v3494_v42 = vld [vmem:[%s5330_s7 + $0x1] ss:$0 sm:$0xff] }
 0x808   : > { %v2905_v8 = vrot.slane %v2877_v33, %v5094_v6  ;;  %v2724_v61 = vcombine.high %v2720_v19, %v2720_v19  ;;  %v2826_v18 = vcombine.low %v2720_v19, %v2748_v50  ;;  %v2841_v17 = vrot.slane %v3466_v22, %v5094_v6 }
 0x809   : > { %v2876_v24 = vcombine.low %v2722_v3, %v2762_v44  ;;  %v2834_v9 = vrot.slane %v2824_v11, %v5094_v6  ;;  %v2805_v10 = vrot.slane %v2777_v16, %v5094_v6  ;;  %v2791_v23 = vrot.slane %v2775_v1, %v5094_v6  ;;  %v3493_v16 = vld [vmem:[%s5330_s7] ss:$0 sm:$0xff] }
 0x80a   : > { %v2776_v63 = vcombine.low %v2706_v36, %v2724_v61  ;;  %v2875_v27 = vcombine.low %v2699_v12, %v2723_v14  ;;  %v2848_v5 = vrot.slane %v2826_v18, %v5094_v6  ;;  %v2855_v57 = vrot.slane %v3467_v40, %v5094_v6 }
 0x80b   : > { %v2898_v2 = vrot.slane %v2876_v24, %v5094_v6  ;;  %v2856_v32 = vcombine.low %v2834_v9, %v2841_v17  ;;  %v2884_v26 = vrot.slane %v2874_v62, %v5094_v6  ;;  %v2806_v51 = vcombine.low %v2784_v20, %v2791_v23  ;;  %s5235_s12 = scalar_lea.hbm %s5331_s23, %s3496_s19 }
 0x80c   : > { %v2798_v29 = vrot.slane %v2776_v63, %v5094_v6  ;;  %v2891_v60 = vrot.slane %v2875_v27, %v5094_v6  ;;  %v2857_v13 = vcombine.low %v2848_v5, %v2855_v57 }
 0x80d   : > { %v2907_v55 = vcombine.low %v2898_v2, %v2905_v8  ;;  %v2864_v25 = vrot.slane %v2856_v32, %v5094_v6  ;;  %v2814_v50 = vrot.slane %v2806_v51, %v5094_v6 }
 0x80e   : > { %v2906_v28 = vcombine.low %v2884_v26, %v2891_v60  ;;  %v2807_v41 = vcombine.low %v2798_v29, %v2805_v10  ;;  %v2871_v34 = vrot.slane %v2857_v13, %v5094_v6 }
 0x80f   : > { %v2921_v15 = vrot.slane %v2907_v55, %v5094_v6 }
 0x810   : > { %v2914_v58 = vrot.slane %v2906_v28, %v5094_v6  ;;  %v2821_v37 = vrot.slane %v2807_v41, %v5094_v6  ;;  %v2872_v45 = vcombine.low %v2864_v25, %v2871_v34 }
 0x812   : > { %v2922_v39 = vcombine.low %v2914_v58, %v2921_v15  ;;  %v2822_v30 = vcombine.low %v2814_v50, %v2821_v37  ;;  %v2925_v21 = vpack.c.bf16 %v2872_v45, %v2872_v45 }
 0x814   : > { %v2926_v49 = vpack.c.bf16 %v2922_v39, %v2922_v39  ;;  %v2924_v44 = vpack.c.bf16 %v2822_v30, %v2822_v30  ;;  %3158 = vmatprep.mubr.bf16.mxu1 %v2925_v21 }
 0x816   : > { %3758 = vmatmul.mubr.bf16.vlgmr.msra.gmra.mrb[40].mxu0 %v2926_v49  ;;  %3159 = vmatmul.mubr.bf16.vlgmr.msra.gmra.mrb[52].mxu1 %v2924_v44 }
 0x8e9   : > { %v3200_v31 = vpop.f32.mrb[40].mxu0  ;;  %v3586_v52 = vpop.f32.mrb[52].mxu1 }
 0x8ea   : > { %v3759_v38 = vpop.f32.mrb[41].mxu0  ;;  %v3587_v59 = vpop.f32.mrb[53].mxu1 }
 0x8eb   : > { %v3203_v46 = vpop.f32.mrb[42].mxu0  ;;  %v3588_v0 = vadd.f32 %v3587_v59, %v3586_v52  ;;  %v3589_v6 = vpop.f32.mrb[54].mxu1 }
 0x8ec   : > { %v3760_v40 = vpop.f32.mrb[43].mxu0  ;;  %v3590_v54 = vpop.f32.mrb[55].mxu1 }
 0x8ed   : > { %v3161_v4 = vadd.f32 %v3588_v0, %v3468_v53 }
 0x8ef   : > { %v3201_v7 = vadd.f32 %v3200_v31, %v3161_v4 }
 0x8f1   : > { %3208 = vadd.xlane.f32.xlu0 %v3201_v7 }
 0x97e   : > { %v3209_v48 = vpop.xlane.xlu0 %3208 }
 0x97f   : > { %v3210_v47 = vmul.f32 0.0078125, %v3209_v48 }
 0x981   : > { %v3211_v56 = vsub.f32 %v3201_v7, %v3210_v47 }
 0x983   : > { %v3212_v35 = vmul.f32 %v3211_v56, %v3211_v56 }
 0x985   : > { %3213 = vadd.xlane.f32.xlu1 %v3212_v35 }
 0xa12   : > { %v3214_v43 = vpop.xlane.xlu1 %3213 }
 0xa13   : > { %v3215_v11 = vmul.f32 0.0078125, %v3214_v43 }
 0xa15   : > { %v3216_v12 = vadd.f32 1e-05, %v3215_v11 }
 0xa17   : > { %4041 = vrsqrt.f32 %v3216_v12 }
 0xa21   : > { %v4042_v36 = vpop.eup %4041 }
 0xa22   : > { %v3218_v33 = vmul.f32 %v4042_v36, %v3211_v56 }
 0xa24   : > { %v3223_v19 = vmul.f32 %v3493_v16, %v3218_v33 }
 0xa26   : > { %v3228_v20 = vadd.f32 %v3494_v42, %v3223_v19 }
 0xa28   : > { %v3230_v62 = vmul.f32 0.044715, %v3228_v20  ;;  %v3229_v1 = vmul.f32 0.5, %v3228_v20 }
 0xa2a   : > { %v3231_v3 = vmul.f32 %v3230_v62, %v3228_v20 }
 0xa2c   : > { %v3232_v22 = vmul.f32 %v3231_v3, %v3228_v20 }
 0xa2e   : > { %v3233_v8 = vadd.f32 %v3232_v22, %v3228_v20 }
 0xa30   : > { %v3234_v14 = vmul.f32 0.7978846, %v3233_v8 }
 0xa32   : > { %4043 = vtanh.f32 %v3234_v14 }
 0xa3c   : > { %v4044_v61 = vpop.eup %4043 }
 0xa3d   : > { %v3236_v18 = vadd.f32 1.0, %v4044_v61 }
 0xa3f   : > { %v3237_v17 = vmul.f32 %v3236_v18, %v3229_v1 }
 0xa41   : > { %3238 = vst [vmem:[%s541_s9] sm:$0xff] %v3237_v17 }
 0xa42   : > { %4256 = shalt.err (!%p4253_p8)
}
 0xa43   : > { %s4257_s29 = scalar_lea.hbm %s5235_s12, 128  ;;  %s4261_s13 = scalar_lea.hbm %s5331_s23, 256 }
 0xa44   : > { %p4258_p7 = scmp.ne.s32.totalorder %s5235_s12, %s4257_s29  ;;  %p4262_p3 = scmp.lt.u32.totalorder %s5235_s12, %s5331_s23 }
 0xa45   : > { %p4263_p0 = scmp.lt.u32.totalorder %s4261_s13, %s4257_s29  ;;  %p4265_p6 = scmp.lt.u32.totalorder %s4257_s29, %s5235_s12 }
 0xa46   : > { %p4259_p9 = pnand %p4258_p7, %p5332_p5 }
 0xa47   : > { %p4264_p2 = por %p4263_p0, %p4262_p3 }
 0xa48   : > { %p4260_p4 = pneg %p4259_p9 }
 0xa49   : > { %p4266_p10 = por %p4265_p6, %p4264_p2 }
 0xa4b   : > { %p4267_p1 = pnand %p4266_p10, %p4260_p4 }
 0xa4d   : > { %4270 = shalt.err (!%p4267_p1)
}
 0xa4e   : > { %3787 = dma.vmem_to_hbm [thread:$0]  (%p5332_p5), %s5237_s15, 128, %s5235_s12, %s3240_s11  }
 0xa4f PF: > { %s3265_s22 = sand.u32 1, %s4309_s25   ;;  %p5333_p11 = scmp.ne.s32.totalorder %s5317_s30, 0 }
 0xa50   : > { %p5334_p12 = scmp.ge.s32.totalorder %s4321_s28, 2  ;;  %s3266_s24 = scalar_lea.sflag [#allocation4], %s3265_s22 }
 0xa52   : > { %p3813_p13 = pnand %p5334_p12, %p5333_p11 }
 0xa54   : > { %4304 = dma.done.wait (!%p3813_p13), %s3266_s24, 128  }
 0xa55   : > { %4306 = vsyncadd (!%p3813_p13), %s3266_s24, 4294967168  ;;  %p29_p8 = scmp.ge.s32.totalorder %s4590_s16, 4   ;;  %s5335_s25 = smov %s4313_s26 }
 0xa56   : > { %s5336_s26 = smov %s4317_s27  ;;  %s5337_s27 = smov %s4601_s1 }
 0xa57   : > { %s5338_s28 = smov %s4590_s16  ;;  %31 = sbr.rel (!%p29_p8) target bundleno = 15 (0xf), region = 141 }
 0xa5e   :  { %3271 = vsyncpa [#allocation3], 1 }
 0xa5f   :  { %3273 = vsyncpa [#allocation3 + $0x1], 1 }
 0xa60   :  { %3274 = vsyncpa [#allocation6], 1 }
 0xa61   :  { %3275 = vsyncpa [#allocation9], 1 }
 0xa62   :  { %3276 = vsyncpa [#allocation12], 1 }
 0xa63   :  { %3277 = vsyncpa [#allocation4], 1 }
 0xa64   :  { %3279 = vsyncpa [#allocation4 + $0x1], 1 }

</bundles_post_ra>
